<compile_context>
chip_gen: v5e
topology: v5e:2x2
jax: 0.10.0
libtpu: 0.0.40
codegen_flags: <defaults>
</compile_context>

<pallas_src>
import functools
import math

import jax
import jax.numpy as jnp
from jax.experimental import pallas as pl
from jax.experimental.pallas import tpu as pltpu


# ----------------------------------------------------------------------------
# helpers
# ----------------------------------------------------------------------------
def _tile(dim, target, aligns):
    """Largest divisor of `dim` <= target that is a multiple of one of the
    preferred alignments (tried in order); falls back to the full extent
    (always a legal block)."""
    if dim <= target:
        return dim
    for align in aligns:
        t = (target // align) * align
        while t >= align:
            if dim % t == 0:
                return t
            t -= align
    return dim


# 48 MiB: leaves headroom on v7x (64 MiB/TC) for double-buffering + compiler
# scratch; generous but safe on v5e/v6e (128 MiB).
_VMEM_LIMIT_BYTES = 48 * 1024 * 1024


# ----------------------------------------------------------------------------
# Pallas kernels
# ----------------------------------------------------------------------------
def _matmul_kernel(a_ref, b_ref, o_ref, acc_ref):
    @pl.when(pl.program_id(2) == 0)
    def _():
        acc_ref[...] = jnp.zeros_like(acc_ref)

    acc_ref[...] += jnp.dot(
        a_ref[...], b_ref[...], preferred_element_type=jnp.float32
    )

    @pl.when(pl.program_id(2) == pl.num_programs(2) - 1)
    def _():
        o_ref[...] = acc_ref[...].astype(o_ref.dtype)


def _matmul_res_kernel(a_ref, b_ref, r_ref, o_ref, acc_ref):
    @pl.when(pl.program_id(2) == 0)
    def _():
        acc_ref[...] = jnp.zeros_like(acc_ref)

    acc_ref[...] += jnp.dot(
        a_ref[...], b_ref[...], preferred_element_type=jnp.float32
    )

    @pl.when(pl.program_id(2) == pl.num_programs(2) - 1)
    def _():
        o_ref[...] = (acc_ref[...] + r_ref[...].astype(jnp.float32)).astype(
            o_ref.dtype
        )


def _ffn13_kernel(x_ref, w1_ref, w3_ref, o_ref, acc1_ref, acc3_ref):
    """Accumulate x@w1 and x@w3 over K; epilogue applies silu(a)*b."""
    @pl.when(pl.program_id(2) == 0)
    def _():
        acc1_ref[...] = jnp.zeros_like(acc1_ref)
        acc3_ref[...] = jnp.zeros_like(acc3_ref)

    x = x_ref[...]
    acc1_ref[...] += jnp.dot(x, w1_ref[...], preferred_element_type=jnp.float32)
    acc3_ref[...] += jnp.dot(x, w3_ref[...], preferred_element_type=jnp.float32)

    @pl.when(pl.program_id(2) == pl.num_programs(2) - 1)
    def _():
        a = acc1_ref[...]
        b = acc3_ref[...]
        o_ref[...] = (a * jax.nn.sigmoid(a) * b).astype(o_ref.dtype)


def _rmsnorm_kernel(x_ref, w_ref, o_ref, *, eps):
    x = x_ref[...].astype(jnp.float32)
    ms = jnp.mean(x * x, axis=-1, keepdims=True)
    o_ref[...] = (
        x * jax.lax.rsqrt(ms + eps) * w_ref[...].astype(jnp.float32)
    ).astype(o_ref.dtype)


def _rope_kernel(x_ref, cos_ref, sin_ref, o_ref, *, half):
    """Rotate-half RoPE on a (ts, hd) head tile.
    cos_ref = [cos, cos], sin_ref = [-sin, sin] along the head dim."""
    x = x_ref[0, 0].astype(jnp.float32)                       # (ts, hd)
    rot = jnp.concatenate([x[:, half:], x[:, :half]], axis=-1)
    # TODO(synk): use pltpu.roll(x, shift=half, axis=-1) when head_dim is a
    # multiple of 256 (lane-aligned halves) to move the rotate onto the XLU.
    o_ref[0, 0] = (x * cos_ref[...] + rot * sin_ref[...]).astype(o_ref.dtype)


def _flash_attn_kernel(q_ref, k_ref, v_ref, o_ref, m_sc, l_sc, acc_sc,
                       *, scale, start_pos, tq, tk):
    """One (batch, head, q-block) per outer grid point; kv-blocks innermost
    with online-softmax accumulators kept in VMEM scratch."""
    qi = pl.program_id(2)
    ki = pl.program_id(3)

    @pl.when(ki == 0)
    def _():
        m_sc[...] = jnp.full_like(m_sc, -jnp.inf)
        l_sc[...] = jnp.zeros_like(l_sc)
        acc_sc[...] = jnp.zeros_like(acc_sc)

    q_lo = start_pos + qi * tq       # absolute position of first query row
    k_lo = ki * tk                   # absolute position of first key row

    @pl.when(k_lo <= q_lo + tq - 1)  # skip fully-masked (future) kv blocks
    def _():
        q = q_ref[0, 0] * scale                               # (tq, hd) bf16
        # q @ k^T via dot_general (contract dim 1 on both) -> no in-kernel .T
        s = jax.lax.dot_general(
            q, k_ref[0, 0], (((1,), (1,)), ((), ())),
            preferred_element_type=jnp.float32,
        )                                                     # (tq, tk) f32
        rows = q_lo + jax.lax.broadcasted_iota(jnp.int32, (tq, tk), 0)
        cols = k_lo + jax.lax.broadcasted_iota(jnp.int32, (tq, tk), 1)
        s = jnp.where(cols <= rows, s, jnp.float32(-1e30))
        m_new = jnp.maximum(m_sc[...], jnp.max(s, axis=-1, keepdims=True))
        alpha = jnp.exp(m_sc[...] - m_new)
        p = jnp.exp(s - m_new)
        l_sc[...] = alpha * l_sc[...] + jnp.sum(p, axis=-1, keepdims=True)
        acc_sc[...] = alpha * acc_sc[...] + jnp.dot(
            p.astype(v_ref.dtype), v_ref[0, 0],
            preferred_element_type=jnp.float32)
        m_sc[...] = m_new

    @pl.when(ki == pl.num_programs(3) - 1)
    def _():
        # exact divide in the once-per-tile epilogue (reference parity).
        o_ref[0, 0] = (acc_sc[...] / l_sc[...]).astype(o_ref.dtype)


# ----------------------------------------------------------------------------
# Pallas wrappers
# ----------------------------------------------------------------------------
def pallas_matmul(x, w, out_dtype=None, residual=None,
                  tm=512, tn=512, tk=1024):
    """x: (M, K), w: (K, N) already (in, out). Optional residual (M, N) added
    in the epilogue. bf16 MXU inputs, f32 accumulation."""
    M, K = x.shape
    Kw, N = w.shape
    assert K == Kw
    out_dtype = out_dtype or x.dtype
    tm = _tile(M, tm, (16, 8))
    tn = _tile(N, tn, (256, 128))
    tk = _tile(K, tk, (256, 128))
    grid = (M // tm, N // tn, K // tk)
    cp = pltpu.CompilerParams(
        dimension_semantics=("parallel", "parallel", "arbitrary"),
        vmem_limit_bytes=_VMEM_LIMIT_BYTES,
    )
    a_spec = pl.BlockSpec((tm, tk), lambda i, j, k: (i, k))
    b_spec = pl.BlockSpec((tk, tn), lambda i, j, k: (k, j))
    o_spec = pl.BlockSpec((tm, tn), lambda i, j, k: (i, j))
    if residual is None:
        return pl.pallas_call(
            _matmul_kernel,
            out_shape=jax.ShapeDtypeStruct((M, N), out_dtype),
            grid=grid,
            in_specs=[a_spec, b_spec],
            out_specs=o_spec,
            scratch_shapes=[pltpu.VMEM((tm, tn), jnp.float32)],
            compiler_params=cp,
        )(x, w)
    r_spec = pl.BlockSpec((tm, tn), lambda i, j, k: (i, j))
    return pl.pallas_call(
        _matmul_res_kernel,
        out_shape=jax.ShapeDtypeStruct((M, N), out_dtype),
        grid=grid,
        in_specs=[a_spec, b_spec, r_spec],
        out_specs=o_spec,
        scratch_shapes=[pltpu.VMEM((tm, tn), jnp.float32)],
        compiler_params=cp,
    )(x, w, residual)


def pallas_ffn13(x, w1t, w3t, out_dtype=jnp.bfloat16, tm=512, tn=512, tk=1024):
    """silu(x @ w1t) * (x @ w3t), fused. x:(M,K) w1t/w3t:(K,F)."""
    M, K = x.shape
    _, F = w1t.shape
    tm = _tile(M, tm, (16, 8))
    tn = _tile(F, tn, (256, 128))
    tk = _tile(K, tk, (256, 128))
    grid = (M // tm, F // tn, K // tk)
    return pl.pallas_call(
        _ffn13_kernel,
        out_shape=jax.ShapeDtypeStruct((M, F), out_dtype),
        grid=grid,
        in_specs=[
            pl.BlockSpec((tm, tk), lambda i, j, k: (i, k)),
            pl.BlockSpec((tk, tn), lambda i, j, k: (k, j)),
            pl.BlockSpec((tk, tn), lambda i, j, k: (k, j)),
        ],
        out_specs=pl.BlockSpec((tm, tn), lambda i, j, k: (i, j)),
        scratch_shapes=[
            pltpu.VMEM((tm, tn), jnp.float32),
            pltpu.VMEM((tm, tn), jnp.float32),
        ],
        compiler_params=pltpu.CompilerParams(
            dimension_semantics=("parallel", "parallel", "arbitrary"),
            vmem_limit_bytes=_VMEM_LIMIT_BYTES,
        ),
    )(x, w1t, w3t)


def pallas_rmsnorm(x, w, eps, out_dtype=jnp.bfloat16):
    """x: (M, D) f32 residual, w: (D,). Row-tiled RMSNorm, bf16 output."""
    M, D = x.shape
    tm = _tile(M, 512, (16, 8))
    return pl.pallas_call(
        functools.partial(_rmsnorm_kernel, eps=eps),
        out_shape=jax.ShapeDtypeStruct((M, D), out_dtype),
        grid=(M // tm,),
        in_specs=[
            pl.BlockSpec((tm, D), lambda i: (i, 0)),
            pl.BlockSpec((1, D), lambda i: (0, 0)),
        ],
        out_specs=pl.BlockSpec((tm, D), lambda i: (i, 0)),
        compiler_params=pltpu.CompilerParams(
            dimension_semantics=("parallel",)),
    )(x, w.reshape(1, D))


def pallas_rope(x, cos_full, sin_signed):
    """x: (B, H, S, hd) bf16. cos_full/sin_signed: (S, hd) f32
    rotate-half tables ([cos,cos] / [-sin,sin])."""
    B, H, S, hd = x.shape
    ts = _tile(S, 512, (16, 8))
    return pl.pallas_call(
        functools.partial(_rope_kernel, half=hd // 2),
        out_shape=jax.ShapeDtypeStruct(x.shape, x.dtype),
        grid=(B, H, S // ts),
        in_specs=[
            pl.BlockSpec((1, 1, ts, hd), lambda b, h, si: (b, h, si, 0)),
            pl.BlockSpec((ts, hd), lambda b, h, si: (si, 0)),
            pl.BlockSpec((ts, hd), lambda b, h, si: (si, 0)),
        ],
        out_specs=pl.BlockSpec((1, 1, ts, hd), lambda b, h, si: (b, h, si, 0)),
        compiler_params=pltpu.CompilerParams(
            dimension_semantics=("parallel", "parallel", "parallel"),
            vmem_limit_bytes=_VMEM_LIMIT_BYTES,
        ),
    )(x, cos_full, sin_signed)


def pallas_flash_attention(q, k, v, *, scale, start_pos, kv_len,
                           tq=256, tkv=512):
    """q: (B, H, S, hd) bf16; k, v: (B, H, Tmax, hd) bf16 with Tmax >= kv_len
    (k/v may be full cache buffers — masking limits attention to positions
    < kv_len). Returns (B, H, S, hd) bf16."""
    B, H, S, hd = q.shape
    Tmax = k.shape[2]
    tq = _tile(S, tq, (16, 8))
    tkv = _tile(Tmax, tkv, (16, 8))
    nq = S // tq
    nk = (kv_len + tkv - 1) // tkv      # only blocks that can hold visible keys
    grid = (B, H, nq, nk)
    kern = functools.partial(_flash_attn_kernel, scale=scale,
                             start_pos=start_pos, tq=tq, tk=tkv)
    return pl.pallas_call(
        kern,
        out_shape=jax.ShapeDtypeStruct((B, H, S, hd), jnp.bfloat16),
        grid=grid,
        in_specs=[
            pl.BlockSpec((1, 1, tq, hd), lambda b, h, qi, ki: (b, h, qi, 0)),
            pl.BlockSpec((1, 1, tkv, hd), lambda b, h, qi, ki: (b, h, ki, 0)),
            pl.BlockSpec((1, 1, tkv, hd), lambda b, h, qi, ki: (b, h, ki, 0)),
        ],
        out_specs=pl.BlockSpec((1, 1, tq, hd),
                               lambda b, h, qi, ki: (b, h, qi, 0)),
        scratch_shapes=[
            pltpu.VMEM((tq, 1), jnp.float32),    # running max
            pltpu.VMEM((tq, 1), jnp.float32),    # running denom
            pltpu.VMEM((tq, hd), jnp.float32),   # running numerator
        ],
        compiler_params=pltpu.CompilerParams(
            dimension_semantics=("parallel", "parallel", "parallel",
                                 "arbitrary"),
            vmem_limit_bytes=_VMEM_LIMIT_BYTES,
        ),
    )(q, k, v)


# ----------------------------------------------------------------------------
# Plain-JAX glue (embedding lookup, RoPE tables, cache update).
# ----------------------------------------------------------------------------
def rope_tables(head_dim, start_pos, seqlen, theta=10000.0):
    """Rotate-half tables: cos_full = [cos, cos], sin_signed = [-sin, sin]."""
    freqs = 1.0 / (
        theta ** (jnp.arange(0, head_dim, 2, dtype=jnp.float32) / head_dim)
    )
    t = jnp.arange(start_pos, start_pos + seqlen, dtype=jnp.float32)
    ang = jnp.outer(t, freqs)                            # (S, hd//2)
    cos = jnp.cos(ang)
    sin = jnp.sin(ang)
    cos_full = jnp.concatenate([cos, cos], axis=-1)      # (S, hd)
    sin_signed = jnp.concatenate([-sin, sin], axis=-1)   # (S, hd)
    return cos_full, sin_signed


def _to_rotate_half_basis(w_t, n_heads, head_dim):
    """Reorder each head's output columns from interleaved (re,im,re,im,...)
    to rotate-half ([re..., im...]) so rotate-half RoPE is exactly equivalent
    to the reference interleaved-pair RoPE (q.k dots are invariant to the
    shared per-head permutation).  w_t: (in, out=n_heads*head_dim)."""
    d_in, d_out = w_t.shape
    w = w_t.reshape(d_in, n_heads, head_dim // 2, 2)
    w = jnp.concatenate([w[..., 0], w[..., 1]], axis=-1)
    return w.reshape(d_in, d_out)


def init_params(key, cfg):
    D, F, V = cfg["dim"], cfg["ffn"], cfg["vocab"]
    H, hd = cfg["n_heads"], cfg["head_dim"]
    bf16 = jnp.bfloat16

    def normal(k, shape):
        return jax.random.normal(k, shape, jnp.float32) * 0.02

    keys = jax.random.split(key, 2 + cfg["n_layers"])
    params = {
        "tok_embeddings": normal(keys[0], (V, D)),
        "norm": jnp.ones((D,), jnp.float32),
        # dim -> dim per docstring output shape (non-standard lm_head).
        "output": normal(keys[1], (D, D)).T.astype(bf16),   # stored (in, out)
        "layers": [],
    }
    for li in range(cfg["n_layers"]):
        lk = jax.random.split(keys[2 + li], 7)
        wq_t = _to_rotate_half_basis(normal(lk[0], (D, D)).T, H, hd)
        wk_t = _to_rotate_half_basis(normal(lk[1], (D, D)).T, H, hd)
        wv_t = normal(lk[2], (D, D)).T
        params["layers"].append(
            {
                # fused QKV weight, pre-transposed to (in, 3*out), bf16.
                "wqkv": jnp.concatenate([wq_t, wk_t, wv_t], axis=1).astype(bf16),
                "wo": normal(lk[3], (D, D)).T.astype(bf16),   # (in, out)
                "w1": normal(lk[4], (F, D)).T.astype(bf16),   # (D, F)
                "w2": normal(lk[5], (D, F)).T.astype(bf16),   # (F, D)
                "w3": normal(lk[6], (F, D)).T.astype(bf16),   # (D, F)
                "attention_norm": jnp.ones((D,), jnp.float32),
                "ffn_norm": jnp.ones((D,), jnp.float32),
            }
        )
    return params


def llama_forward(params, tokens, start_pos, cfg, caches=None):
    """tokens: (B, S) int32, start_pos: python int. Returns ((B, S, dim) f32,
    updated caches). caches (if given): list of (k, v) with shape
    (B, H, max_seq_len, hd) bf16. If caches is None, start_pos must be 0."""
    B, S = tokens.shape
    D, H, hd = cfg["dim"], cfg["n_heads"], cfg["head_dim"]
    eps = cfg["eps"]
    scale = 1.0 / math.sqrt(hd)
    T = start_pos + S
    bf16 = jnp.bfloat16
    if caches is None and start_pos != 0:
        raise ValueError("start_pos > 0 requires carried KV caches")

    M = B * S
    h = params["tok_embeddings"][tokens]          # (B, S, D) f32 residual
    cos_full, sin_signed = rope_tables(hd, start_pos, S)

    new_caches = []
    for li, layer in enumerate(params["layers"]):
        h2 = h.reshape(M, D)

        # --- attention block: RMSNorm -> fused QKV -> RoPE -> flash attn -> wo+res
        xn = pallas_rmsnorm(h2, layer["attention_norm"], eps)      # (M, D) bf16
        xqkv = pallas_matmul(xn, layer["wqkv"], out_dtype=bf16)    # (M, 3D) bf16
        xqkv = xqkv.reshape(B, S, 3, H, hd)
        # TODO(synk): for head_dim % 128 == 0, read q/k/v head blocks straight
        # out of the fused QKV output inside the attention kernel and drop
        # these plain-JAX transposes.
        xq = jnp.transpose(xqkv[:, :, 0], (0, 2, 1, 3))   # (B, H, S, hd)
        xk = jnp.transpose(xqkv[:, :, 1], (0, 2, 1, 3))
        xv = jnp.transpose(xqkv[:, :, 2], (0, 2, 1, 3))
        xq = pallas_rope(xq, cos_full, sin_signed)
        xk = pallas_rope(xk, cos_full, sin_signed)

        if caches is not None:
            ck, cv = caches[li]                           # (B,H,max_seq,hd)
            # TODO(synk): alias/donate the cache buffers (input_output_aliases)
            # so this update is in-place instead of a full-cache copy.
            ck = jax.lax.dynamic_update_slice(ck, xk, (0, 0, start_pos, 0))
            cv = jax.lax.dynamic_update_slice(cv, xv, (0, 0, start_pos, 0))
            new_caches.append((ck, cv))
            # pass the full buffers; the attention grid covers only
            # ceil(T/tkv) kv blocks and the causal mask hides the tail —
            # no [:, :, :T] prefix copy.
            keys, values = ck, cv
        else:
            keys, values = xk, xv

        attn = pallas_flash_attention(xq, keys, values, scale=scale,
                                      start_pos=start_pos, kv_len=T)
        attn = jnp.transpose(attn, (0, 2, 1, 3)).reshape(M, D)
        h2 = pallas_matmul(attn, layer["wo"],
                           out_dtype=jnp.float32, residual=h2)      # +res

        # --- feed-forward block: RMSNorm -> fused SwiGLU(w1,w3) -> w2+res
        xn = pallas_rmsnorm(h2, layer["ffn_norm"], eps)              # bf16
        g = pallas_ffn13(xn, layer["w1"], layer["w3"])               # (M,F)
        h2 = pallas_matmul(g, layer["w2"], out_dtype=jnp.float32,
                           residual=h2)                              # +res
        h = h2.reshape(B, S, D)

    hn = pallas_rmsnorm(h.reshape(M, D), params["norm"], eps)        # bf16
    out = pallas_matmul(hn, params["output"], out_dtype=jnp.float32)
    return out.reshape(B, S, D), (new_caches if caches is not None else None)


if __name__ == "__main__":
    cfg = dict(
        vocab=256,
        dim=128,
        n_layers=2,
        n_heads=4,
        head_dim=32,
        ffn=512,
        max_seq_len=32,
        eps=1e-5,
    )
    assert cfg["dim"] == cfg["n_heads"] * cfg["head_dim"]
    key = jax.random.PRNGKey(0)
    pkey, tkey = jax.random.split(key)
    params = init_params(pkey, cfg)

    batch, seq = 2, 8
    tokens = jax.random.randint(tkey, (batch, seq), 0, cfg["vocab"],
                                dtype=jnp.int32)
    start_pos = 0

    fwd = jax.jit(lambda p, t: llama_forward(p, t, start_pos, cfg)[0])
    out = jax.block_until_ready(fwd(params, tokens))
    assert out.shape == (batch, seq, cfg["dim"]), out.shape
    assert jnp.all(jnp.isfinite(out.astype(jnp.float32)))
    print("KERNEL_OK")
</pallas_src>

<mosaic_0001>
module attributes {stable_mosaic.version = 11 : i64} {
  func.func @_rope_kernel(%arg0: i32, %arg1: i32, %arg2: i32, %arg3: memref<1x1x8x32xbf16, #tpu.memory_space<vmem>>, %arg4: memref<8x32xf32, #tpu.memory_space<vmem>>, %arg5: memref<8x32xf32, #tpu.memory_space<vmem>>, %arg6: memref<1x1x8x32xbf16, #tpu.memory_space<vmem>>) attributes {dimension_semantics = [#tpu.dimension_semantics<parallel>, #tpu.dimension_semantics<parallel>, #tpu.dimension_semantics<parallel>], iteration_bounds = array<i64: 2, 4, 1>, scalar_prefetch = 0 : i64, scratch_operands = 0 : i64, tpu.core_type = #tpu.core_type<tc>, window_params = [{transform_indices = @transform_0, window_bounds = array<i64: 1, 1, 8, 32>}, {transform_indices = @transform_1, window_bounds = array<i64: 8, 32>}, {transform_indices = @transform_2, window_bounds = array<i64: 8, 32>}, {transform_indices = @transform_3, window_bounds = array<i64: 1, 1, 8, 32>}]} {
    %c0 = arith.constant 0 : index
    %c0_0 = arith.constant 0 : index
    %c0_1 = arith.constant 0 : index
    %c0_2 = arith.constant 0 : index
    %0 = vector.load %arg3[%c0, %c0_0, %c0_1, %c0_2] : memref<1x1x8x32xbf16, #tpu.memory_space<vmem>>, vector<1x1x8x32xbf16>
    %1 = vector.shape_cast %0 : vector<1x1x8x32xbf16> to vector<8x32xbf16>
    %2 = arith.extf %1 : vector<8x32xbf16> to vector<8x32xf32>
    %3 = vector.extract_strided_slice %2 {offsets = [0, 16], sizes = [8, 16], strides = [1, 1]} : vector<8x32xf32> to vector<8x16xf32>
    %4 = vector.extract_strided_slice %2 {offsets = [0, 0], sizes = [8, 16], strides = [1, 1]} : vector<8x32xf32> to vector<8x16xf32>
    %5 = tpu.concatenate %3, %4 in 1 : vector<8x16xf32>, vector<8x16xf32> -> vector<8x32xf32>
    %c0_3 = arith.constant 0 : index
    %c0_4 = arith.constant 0 : index
    %6 = vector.load %arg4[%c0_3, %c0_4] : memref<8x32xf32, #tpu.memory_space<vmem>>, vector<8x32xf32>
    %7 = arith.mulf %2, %6 : vector<8x32xf32>
    %c0_5 = arith.constant 0 : index
    %c0_6 = arith.constant 0 : index
    %8 = vector.load %arg5[%c0_5, %c0_6] : memref<8x32xf32, #tpu.memory_space<vmem>>, vector<8x32xf32>
    %9 = arith.mulf %5, %8 : vector<8x32xf32>
    %10 = arith.addf %7, %9 : vector<8x32xf32>
    %11 = arith.truncf %10 : vector<8x32xf32> to vector<8x32xbf16>
    %c0_7 = arith.constant 0 : index
    %c0_8 = arith.constant 0 : index
    %c0_9 = arith.constant 0 : index
    %c0_10 = arith.constant 0 : index
    %12 = vector.load %arg6[%c0_7, %c0_8, %c0_9, %c0_10] : memref<1x1x8x32xbf16, #tpu.memory_space<vmem>>, vector<1x1x8x32xbf16>
    %13 = vector.shape_cast %12 : vector<1x1x8x32xbf16> to vector<8x32xbf16>
    %14 = vector.shape_cast %11 : vector<8x32xbf16> to vector<1x1x8x32xbf16>
    tpu.vector_store %arg6[%c0_7, %c0_8, %c0_9, %c0_10], %14 {strides = array<i32>} : memref<1x1x8x32xbf16, #tpu.memory_space<vmem>>, vector<1x1x8x32xbf16>,
    return
  }
  func.func @transform_0(%arg0: i32, %arg1: i32, %arg2: i32) -> (i32, i32, i32, i32) {
    %c0_i32 = arith.constant 0 : i32
    %c0_i32_0 = arith.constant 0 : i32
    return %arg0, %arg1, %arg2, %c0_i32 : i32, i32, i32, i32
  }
  func.func @transform_1(%arg0: i32, %arg1: i32, %arg2: i32) -> (i32, i32) {
    %c0_i32 = arith.constant 0 : i32
    %c0_i32_0 = arith.constant 0 : i32
    return %arg2, %c0_i32 : i32, i32
  }
  func.func @transform_2(%arg0: i32, %arg1: i32, %arg2: i32) -> (i32, i32) {
    %c0_i32 = arith.constant 0 : i32
    %c0_i32_0 = arith.constant 0 : i32
    return %arg2, %c0_i32 : i32, i32
  }
  func.func @transform_3(%arg0: i32, %arg1: i32, %arg2: i32) -> (i32, i32, i32, i32) {
    %c0_i32 = arith.constant 0 : i32
    %c0_i32_0 = arith.constant 0 : i32
    return %arg0, %arg1, %arg2, %c0_i32 : i32, i32, i32, i32
  }
}

module attributes {stable_mosaic.version = 11 : i64} {
  func.func @_rmsnorm_kernel(%arg0: i32, %arg1: memref<16x128xf32, #tpu.memory_space<vmem>>, %arg2: memref<1x128xf32, #tpu.memory_space<vmem>>, %arg3: memref<16x128xbf16, #tpu.memory_space<vmem>>) attributes {dimension_semantics = [#tpu.dimension_semantics<parallel>], iteration_bounds = array<i64: 1>, scalar_prefetch = 0 : i64, scratch_operands = 0 : i64, tpu.core_type = #tpu.core_type<tc>, window_params = [{transform_indices = @transform_0, window_bounds = array<i64: 16, 128>}, {pipeline_mode = #tpu.pipeline_mode<synchronous>, transform_indices = @transform_1, window_bounds = array<i64: 1, 128>}, {transform_indices = @transform_2, window_bounds = array<i64: 16, 128>}]} {
    %c0 = arith.constant 0 : index
    %c0_0 = arith.constant 0 : index
    %0 = vector.load %arg1[%c0, %c0_0] : memref<16x128xf32, #tpu.memory_space<vmem>>, vector<16x128xf32>
    %1 = arith.mulf %0, %0 : vector<16x128xf32>
    %cst = arith.constant dense<0.000000e+00> : vector<16xf32>
    %2 = vector.multi_reduction <add>, %1, %cst [1] : vector<16x128xf32> to vector<16xf32>
    %3 = vector.shape_cast %2 : vector<16xf32> to vector<16x1xf32>
    %cst_1 = arith.constant 1.280000e+02 : f32
    %4 = vector.broadcast %cst_1 : f32 to vector<16x1xf32>
    %5 = arith.divf %3, %4 : vector<16x1xf32>
    %cst_2 = arith.constant 9.99999974E-6 : f32
    %6 = vector.broadcast %cst_2 : f32 to vector<16x1xf32>
    %7 = arith.addf %5, %6 : vector<16x1xf32>
    %8 = math.rsqrt %7 : vector<16x1xf32>
    %9 = vector.broadcast %8 : vector<16x1xf32> to vector<16x128xf32>
    %10 = arith.mulf %0, %9 : vector<16x128xf32>
    %c0_3 = arith.constant 0 : index
    %c0_4 = arith.constant 0 : index
    %11 = vector.load %arg2[%c0_3, %c0_4] : memref<1x128xf32, #tpu.memory_space<vmem>>, vector<1x128xf32>
    %12 = vector.broadcast %11 : vector<1x128xf32> to vector<16x128xf32>
    %13 = arith.mulf %10, %12 : vector<16x128xf32>
    %14 = arith.truncf %13 : vector<16x128xf32> to vector<16x128xbf16>
    %c0_5 = arith.constant 0 : index
    %c0_6 = arith.constant 0 : index
    %15 = vector.load %arg3[%c0_5, %c0_6] : memref<16x128xbf16, #tpu.memory_space<vmem>>, vector<16x128xbf16>
    tpu.vector_store %arg3[%c0_5, %c0_6], %14 {strides = array<i32>} : memref<16x128xbf16, #tpu.memory_space<vmem>>, vector<16x128xbf16>,
    return
  }
  func.func @transform_0(%arg0: i32) -> (i32, i32) {
    %c0_i32 = arith.constant 0 : i32
    %c0_i32_0 = arith.constant 0 : i32
    return %arg0, %c0_i32 : i32, i32
  }
  func.func @transform_1(%arg0: i32) -> (i32, i32) {
    %c0_i32 = arith.constant 0 : i32
    %c0_i32_0 = arith.constant 0 : i32
    %c0_i32_1 = arith.constant 0 : i32
    return %c0_i32, %c0_i32_0 : i32, i32
  }
  func.func @transform_2(%arg0: i32) -> (i32, i32) {
    %c0_i32 = arith.constant 0 : i32
    %c0_i32_0 = arith.constant 0 : i32
    return %arg0, %c0_i32 : i32, i32
  }
}

module attributes {stable_mosaic.version = 11 : i64} {
  func.func @_matmul_kernel(%arg0: i32, %arg1: i32, %arg2: i32, %arg3: memref<16x128xbf16, #tpu.memory_space<vmem>>, %arg4: memref<128x384xbf16, #tpu.memory_space<vmem>>, %arg5: memref<16x384xbf16, #tpu.memory_space<vmem>>, %arg6: memref<16x384xf32, #tpu.memory_space<vmem>>) attributes {dimension_semantics = [#tpu.dimension_semantics<parallel>, #tpu.dimension_semantics<parallel>, #tpu.dimension_semantics<arbitrary>], iteration_bounds = array<i64: 1, 1, 1>, scalar_prefetch = 0 : i64, scratch_operands = 1 : i64, tpu.core_type = #tpu.core_type<tc>, window_params = [{transform_indices = @transform_0, window_bounds = array<i64: 16, 128>}, {transform_indices = @transform_1, window_bounds = array<i64: 128, 384>}, {transform_indices = @transform_2, window_bounds = array<i64: 16, 384>}]} {
    %c0_i32 = arith.constant 0 : i32
    %0 = arith.cmpi eq, %arg2, %c0_i32 : i32
    %1 = arith.extui %0 : i1 to i32
    %c0_i32_0 = arith.constant 0 : i32
    %2 = arith.cmpi ne, %1, %c0_i32_0 : i32
    scf.if %2 {
      %cst_10 = arith.constant 0.000000e+00 : f32
      %12 = vector.broadcast %cst_10 : f32 to vector<16x384xf32>
      %c0_11 = arith.constant 0 : index
      %c0_12 = arith.constant 0 : index
      %13 = vector.load %arg6[%c0_11, %c0_12] : memref<16x384xf32, #tpu.memory_space<vmem>>, vector<16x384xf32>
      tpu.vector_store %arg6[%c0_11, %c0_12], %12 {strides = array<i32>} : memref<16x384xf32, #tpu.memory_space<vmem>>, vector<16x384xf32>,
    } else {
    }
    %c0 = arith.constant 0 : index
    %c0_1 = arith.constant 0 : index
    %3 = vector.load %arg6[%c0, %c0_1] : memref<16x384xf32, #tpu.memory_space<vmem>>, vector<16x384xf32>
    %c0_2 = arith.constant 0 : index
    %c0_3 = arith.constant 0 : index
    %4 = vector.load %arg3[%c0_2, %c0_3] : memref<16x128xbf16, #tpu.memory_space<vmem>>, vector<16x128xbf16>
    %c0_4 = arith.constant 0 : index
    %c0_5 = arith.constant 0 : index
    %5 = vector.load %arg4[%c0_4, %c0_5] : memref<128x384xbf16, #tpu.memory_space<vmem>>, vector<128x384xbf16>
    %cst = arith.constant dense<0.000000e+00> : vector<16x384xf32>
    %6 = tpu.matmul %4, %5, %cst {dimension_numbers = #tpu.dot_dimension_numbers<[1], [0], [0], [1], [0, 0, 1, 1], [], []>} : vector<16x128xbf16>, vector<128x384xbf16>, vector<16x384xf32> -> vector<16x384xf32>
    %7 = arith.addf %3, %6 : vector<16x384xf32>
    %c0_6 = arith.constant 0 : index
    %c0_7 = arith.constant 0 : index
    %8 = vector.load %arg6[%c0_6, %c0_7] : memref<16x384xf32, #tpu.memory_space<vmem>>, vector<16x384xf32>
    tpu.vector_store %arg6[%c0_6, %c0_7], %7 {strides = array<i32>} : memref<16x384xf32, #tpu.memory_space<vmem>>, vector<16x384xf32>,
    %c0_i32_8 = arith.constant 0 : i32
    %9 = arith.cmpi eq, %arg2, %c0_i32_8 : i32
    %10 = arith.extui %9 : i1 to i32
    %c0_i32_9 = arith.constant 0 : i32
    %11 = arith.cmpi ne, %10, %c0_i32_9 : i32
    scf.if %11 {
      %c0_10 = arith.constant 0 : index
      %c0_11 = arith.constant 0 : index
      %12 = vector.load %arg6[%c0_10, %c0_11] : memref<16x384xf32, #tpu.memory_space<vmem>>, vector<16x384xf32>
      %13 = arith.truncf %12 : vector<16x384xf32> to vector<16x384xbf16>
      %c0_12 = arith.constant 0 : index
      %c0_13 = arith.constant 0 : index
      %14 = vector.load %arg5[%c0_12, %c0_13] : memref<16x384xbf16, #tpu.memory_space<vmem>>, vector<16x384xbf16>
      tpu.vector_store %arg5[%c0_12, %c0_13], %13 {strides = array<i32>} : memref<16x384xbf16, #tpu.memory_space<vmem>>, vector<16x384xbf16>,
    } else {
    }
    return
  }
  func.func @transform_0(%arg0: i32, %arg1: i32, %arg2: i32) -> (i32, i32) {
    %c0_i32 = arith.constant 0 : i32
    return %arg0, %arg2 : i32, i32
  }
  func.func @transform_1(%arg0: i32, %arg1: i32, %arg2: i32) -> (i32, i32) {
    %c0_i32 = arith.constant 0 : i32
    return %arg2, %arg1 : i32, i32
  }
  func.func @transform_2(%arg0: i32, %arg1: i32, %arg2: i32) -> (i32, i32) {
    %c0_i32 = arith.constant 0 : i32
    return %arg0, %arg1 : i32, i32
  }
}

module attributes {stable_mosaic.version = 11 : i64} {
  func.func @_flash_attn_kernel(%arg0: i32, %arg1: i32, %arg2: i32, %arg3: i32, %arg4: memref<1x1x8x32xbf16, #tpu.memory_space<vmem>>, %arg5: memref<1x1x8x32xbf16, #tpu.memory_space<vmem>>, %arg6: memref<1x1x8x32xbf16, #tpu.memory_space<vmem>>, %arg7: memref<1x1x8x32xbf16, #tpu.memory_space<vmem>>, %arg8: memref<8x1xf32, #tpu.memory_space<vmem>>, %arg9: memref<8x1xf32, #tpu.memory_space<vmem>>, %arg10: memref<8x32xf32, #tpu.memory_space<vmem>>) attributes {dimension_semantics = [#tpu.dimension_semantics<parallel>, #tpu.dimension_semantics<parallel>, #tpu.dimension_semantics<parallel>, #tpu.dimension_semantics<arbitrary>], iteration_bounds = array<i64: 2, 4, 1, 1>, scalar_prefetch = 0 : i64, scratch_operands = 3 : i64, tpu.core_type = #tpu.core_type<tc>, window_params = [{transform_indices = @transform_0, window_bounds = array<i64: 1, 1, 8, 32>}, {transform_indices = @transform_1, window_bounds = array<i64: 1, 1, 8, 32>}, {transform_indices = @transform_2, window_bounds = array<i64: 1, 1, 8, 32>}, {transform_indices = @transform_3, window_bounds = array<i64: 1, 1, 8, 32>}]} {
    %c0_i32 = arith.constant 0 : i32
    %0 = arith.cmpi eq, %arg3, %c0_i32 : i32
    %1 = arith.extui %0 : i1 to i32
    %c0_i32_0 = arith.constant 0 : i32
    %2 = arith.cmpi ne, %1, %c0_i32_0 : i32
    scf.if %2 {
      %cst = arith.constant 0xFF800000 : f32
      %14 = vector.broadcast %cst : f32 to vector<8x1xf32>
      %c0 = arith.constant 0 : index
      %c0_7 = arith.constant 0 : index
      %15 = vector.load %arg8[%c0, %c0_7] : memref<8x1xf32, #tpu.memory_space<vmem>>, vector<8x1xf32>
      tpu.vector_store %arg8[%c0, %c0_7], %14 {strides = array<i32>} : memref<8x1xf32, #tpu.memory_space<vmem>>, vector<8x1xf32>,
      %cst_8 = arith.constant 0.000000e+00 : f32
      %16 = vector.broadcast %cst_8 : f32 to vector<8x1xf32>
      %c0_9 = arith.constant 0 : index
      %c0_10 = arith.constant 0 : index
      %17 = vector.load %arg9[%c0_9, %c0_10] : memref<8x1xf32, #tpu.memory_space<vmem>>, vector<8x1xf32>
      tpu.vector_store %arg9[%c0_9, %c0_10], %16 {strides = array<i32>} : memref<8x1xf32, #tpu.memory_space<vmem>>, vector<8x1xf32>,
      %cst_11 = arith.constant 0.000000e+00 : f32
      %18 = vector.broadcast %cst_11 : f32 to vector<8x32xf32>
      %c0_12 = arith.constant 0 : index
      %c0_13 = arith.constant 0 : index
      %19 = vector.load %arg10[%c0_12, %c0_13] : memref<8x32xf32, #tpu.memory_space<vmem>>, vector<8x32xf32>
      tpu.vector_store %arg10[%c0_12, %c0_13], %18 {strides = array<i32>} : memref<8x32xf32, #tpu.memory_space<vmem>>, vector<8x32xf32>,
    } else {
    }
    %c8_i32 = arith.constant 8 : i32
    %3 = arith.muli %arg2, %c8_i32 : i32
    %c0_i32_1 = arith.constant 0 : i32
    %4 = arith.addi %c0_i32_1, %3 : i32
    %c8_i32_2 = arith.constant 8 : i32
    %5 = arith.muli %arg3, %c8_i32_2 : i32
    %c8_i32_3 = arith.constant 8 : i32
    %6 = arith.addi %4, %c8_i32_3 : i32
    %c1_i32 = arith.constant 1 : i32
    %7 = arith.subi %6, %c1_i32 : i32
    %8 = arith.cmpi sle, %5, %7 : i32
    %9 = arith.extui %8 : i1 to i32
    %c0_i32_4 = arith.constant 0 : i32
    %10 = arith.cmpi ne, %9, %c0_i32_4 : i32
    scf.if %10 {
      %c0 = arith.constant 0 : index
      %c0_7 = arith.constant 0 : index
      %c0_8 = arith.constant 0 : index
      %c0_9 = arith.constant 0 : index
      %14 = vector.load %arg4[%c0, %c0_7, %c0_8, %c0_9] : memref<1x1x8x32xbf16, #tpu.memory_space<vmem>>, vector<1x1x8x32xbf16>
      %15 = vector.shape_cast %14 : vector<1x1x8x32xbf16> to vector<8x32xbf16>
      %cst = arith.constant 1.767580e-01 : bf16
      %16 = vector.broadcast %cst : bf16 to vector<8x32xbf16>
      %17 = arith.mulf %15, %16 : vector<8x32xbf16>
      %c0_10 = arith.constant 0 : index
      %c0_11 = arith.constant 0 : index
      %c0_12 = arith.constant 0 : index
      %c0_13 = arith.constant 0 : index
      %18 = vector.load %arg5[%c0_10, %c0_11, %c0_12, %c0_13] : memref<1x1x8x32xbf16, #tpu.memory_space<vmem>>, vector<1x1x8x32xbf16>
      %19 = vector.shape_cast %18 : vector<1x1x8x32xbf16> to vector<8x32xbf16>
      %cst_14 = arith.constant dense<0.000000e+00> : vector<8x8xf32>
      %20 = tpu.matmul %17, %19, %cst_14 {dimension_numbers = #tpu.dot_dimension_numbers<[1], [1], [0], [0], [0, 0, 1, 0], [], []>} : vector<8x32xbf16>, vector<8x32xbf16>, vector<8x8xf32> -> vector<8x8xf32>
      %21 = tpu.iota {dimensions = array<i32: 0>} : vector<8x8xi32>
      %22 = vector.broadcast %4 : i32 to vector<8x8xi32>
      %23 = arith.addi %22, %21 : vector<8x8xi32>
      %24 = tpu.iota {dimensions = array<i32: 1>} : vector<8x8xi32>
      %25 = vector.broadcast %5 : i32 to vector<8x8xi32>
      %26 = arith.addi %25, %24 : vector<8x8xi32>
      %27 = arith.cmpi sle, %26, %23 : vector<8x8xi32>
      %cst_15 = arith.constant -1.000000e+30 : f32
      %28 = vector.broadcast %cst_15 : f32 to vector<8x8xf32>
      %29 = arith.select %27, %20, %28 : vector<8x8xi1>, vector<8x8xf32>
      %c0_16 = arith.constant 0 : index
      %c0_17 = arith.constant 0 : index
      %30 = vector.load %arg8[%c0_16, %c0_17] : memref<8x1xf32, #tpu.memory_space<vmem>>, vector<8x1xf32>
      %cst_18 = arith.constant dense<0xFF800000> : vector<8xf32>
      %31 = vector.multi_reduction <maximumf>, %29, %cst_18 [1] : vector<8x8xf32> to vector<8xf32>
      %32 = vector.shape_cast %31 : vector<8xf32> to vector<8x1xf32>
      %33 = arith.maximumf %30, %32 : vector<8x1xf32>
      %c0_19 = arith.constant 0 : index
      %c0_20 = arith.constant 0 : index
      %34 = vector.load %arg8[%c0_19, %c0_20] : memref<8x1xf32, #tpu.memory_space<vmem>>, vector<8x1xf32>
      %35 = arith.subf %34, %33 : vector<8x1xf32>
      %36 = math.exp %35 : vector<8x1xf32>
      %37 = vector.broadcast %33 : vector<8x1xf32> to vector<8x8xf32>
      %38 = arith.subf %29, %37 : vector<8x8xf32>
      %39 = math.exp %38 : vector<8x8xf32>
      %c0_21 = arith.constant 0 : index
      %c0_22 = arith.constant 0 : index
      %40 = vector.load %arg9[%c0_21, %c0_22] : memref<8x1xf32, #tpu.memory_space<vmem>>, vector<8x1xf32>
      %41 = arith.mulf %36, %40 : vector<8x1xf32>
      %cst_23 = arith.constant dense<0.000000e+00> : vector<8xf32>
      %42 = vector.multi_reduction <add>, %39, %cst_23 [1] : vector<8x8xf32> to vector<8xf32>
      %43 = vector.shape_cast %42 : vector<8xf32> to vector<8x1xf32>
      %44 = arith.addf %41, %43 : vector<8x1xf32>
      %c0_24 = arith.constant 0 : index
      %c0_25 = arith.constant 0 : index
      %45 = vector.load %arg9[%c0_24, %c0_25] : memref<8x1xf32, #tpu.memory_space<vmem>>, vector<8x1xf32>
      tpu.vector_store %arg9[%c0_24, %c0_25], %44 {strides = array<i32>} : memref<8x1xf32, #tpu.memory_space<vmem>>, vector<8x1xf32>,
      %c0_26 = arith.constant 0 : index
      %c0_27 = arith.constant 0 : index
      %46 = vector.load %arg10[%c0_26, %c0_27] : memref<8x32xf32, #tpu.memory_space<vmem>>, vector<8x32xf32>
      %47 = vector.broadcast %36 : vector<8x1xf32> to vector<8x32xf32>
      %48 = arith.mulf %47, %46 : vector<8x32xf32>
      %49 = arith.truncf %39 : vector<8x8xf32> to vector<8x8xbf16>
      %c0_28 = arith.constant 0 : index
      %c0_29 = arith.constant 0 : index
      %c0_30 = arith.constant 0 : index
      %c0_31 = arith.constant 0 : index
      %50 = vector.load %arg6[%c0_28, %c0_29, %c0_30, %c0_31] : memref<1x1x8x32xbf16, #tpu.memory_space<vmem>>, vector<1x1x8x32xbf16>
      %51 = vector.shape_cast %50 : vector<1x1x8x32xbf16> to vector<8x32xbf16>
      %cst_32 = arith.constant dense<0.000000e+00> : vector<8x32xf32>
      %52 = tpu.matmul %49, %51, %cst_32 {dimension_numbers = #tpu.dot_dimension_numbers<[1], [0], [0], [1], [0, 0, 1, 1], [], []>} : vector<8x8xbf16>, vector<8x32xbf16>, vector<8x32xf32> -> vector<8x32xf32>
      %53 = arith.addf %48, %52 : vector<8x32xf32>
      %c0_33 = arith.constant 0 : index
      %c0_34 = arith.constant 0 : index
      %54 = vector.load %arg10[%c0_33, %c0_34] : memref<8x32xf32, #tpu.memory_space<vmem>>, vector<8x32xf32>
      tpu.vector_store %arg10[%c0_33, %c0_34], %53 {strides = array<i32>} : memref<8x32xf32, #tpu.memory_space<vmem>>, vector<8x32xf32>,
      %c0_35 = arith.constant 0 : index
      %c0_36 = arith.constant 0 : index
      %55 = vector.load %arg8[%c0_35, %c0_36] : memref<8x1xf32, #tpu.memory_space<vmem>>, vector<8x1xf32>
      tpu.vector_store %arg8[%c0_35, %c0_36], %33 {strides = array<i32>} : memref<8x1xf32, #tpu.memory_space<vmem>>, vector<8x1xf32>,
    } else {
    }
    %c0_i32_5 = arith.constant 0 : i32
    %11 = arith.cmpi eq, %arg3, %c0_i32_5 : i32
    %12 = arith.extui %11 : i1 to i32
    %c0_i32_6 = arith.constant 0 : i32
    %13 = arith.cmpi ne, %12, %c0_i32_6 : i32
    scf.if %13 {
      %c0 = arith.constant 0 : index
      %c0_7 = arith.constant 0 : index
      %14 = vector.load %arg10[%c0, %c0_7] : memref<8x32xf32, #tpu.memory_space<vmem>>, vector<8x32xf32>
      %c0_8 = arith.constant 0 : index
      %c0_9 = arith.constant 0 : index
      %15 = vector.load %arg9[%c0_8, %c0_9] : memref<8x1xf32, #tpu.memory_space<vmem>>, vector<8x1xf32>
      %16 = vector.broadcast %15 : vector<8x1xf32> to vector<8x32xf32>
      %17 = arith.divf %14, %16 : vector<8x32xf32>
      %18 = arith.truncf %17 : vector<8x32xf32> to vector<8x32xbf16>
      %c0_10 = arith.constant 0 : index
      %c0_11 = arith.constant 0 : index
      %c0_12 = arith.constant 0 : index
      %c0_13 = arith.constant 0 : index
      %19 = vector.load %arg7[%c0_10, %c0_11, %c0_12, %c0_13] : memref<1x1x8x32xbf16, #tpu.memory_space<vmem>>, vector<1x1x8x32xbf16>
      %20 = vector.shape_cast %19 : vector<1x1x8x32xbf16> to vector<8x32xbf16>
      %21 = vector.shape_cast %18 : vector<8x32xbf16> to vector<1x1x8x32xbf16>
      tpu.vector_store %arg7[%c0_10, %c0_11, %c0_12, %c0_13], %21 {strides = array<i32>} : memref<1x1x8x32xbf16, #tpu.memory_space<vmem>>, vector<1x1x8x32xbf16>,
    } else {
    }
    return
  }
  func.func @transform_0(%arg0: i32, %arg1: i32, %arg2: i32, %arg3: i32) -> (i32, i32, i32, i32) {
    %c0_i32 = arith.constant 0 : i32
    %c0_i32_0 = arith.constant 0 : i32
    return %arg0, %arg1, %arg2, %c0_i32 : i32, i32, i32, i32
  }
  func.func @transform_1(%arg0: i32, %arg1: i32, %arg2: i32, %arg3: i32) -> (i32, i32, i32, i32) {
    %c0_i32 = arith.constant 0 : i32
    %c0_i32_0 = arith.constant 0 : i32
    return %arg0, %arg1, %arg3, %c0_i32 : i32, i32, i32, i32
  }
  func.func @transform_2(%arg0: i32, %arg1: i32, %arg2: i32, %arg3: i32) -> (i32, i32, i32, i32) {
    %c0_i32 = arith.constant 0 : i32
    %c0_i32_0 = arith.constant 0 : i32
    return %arg0, %arg1, %arg3, %c0_i32 : i32, i32, i32, i32
  }
  func.func @transform_3(%arg0: i32, %arg1: i32, %arg2: i32, %arg3: i32) -> (i32, i32, i32, i32) {
    %c0_i32 = arith.constant 0 : i32
    %c0_i32_0 = arith.constant 0 : i32
    return %arg0, %arg1, %arg2, %c0_i32 : i32, i32, i32, i32
  }
}

module attributes {stable_mosaic.version = 11 : i64} {
  func.func @_ffn13_kernel(%arg0: i32, %arg1: i32, %arg2: i32, %arg3: memref<16x128xbf16, #tpu.memory_space<vmem>>, %arg4: memref<128x512xbf16, #tpu.memory_space<vmem>>, %arg5: memref<128x512xbf16, #tpu.memory_space<vmem>>, %arg6: memref<16x512xbf16, #tpu.memory_space<vmem>>, %arg7: memref<16x512xf32, #tpu.memory_space<vmem>>, %arg8: memref<16x512xf32, #tpu.memory_space<vmem>>) attributes {dimension_semantics = [#tpu.dimension_semantics<parallel>, #tpu.dimension_semantics<parallel>, #tpu.dimension_semantics<arbitrary>], iteration_bounds = array<i64: 1, 1, 1>, scalar_prefetch = 0 : i64, scratch_operands = 2 : i64, tpu.core_type = #tpu.core_type<tc>, window_params = [{transform_indices = @transform_0, window_bounds = array<i64: 16, 128>}, {transform_indices = @transform_1, window_bounds = array<i64: 128, 512>}, {transform_indices = @transform_2, window_bounds = array<i64: 128, 512>}, {transform_indices = @transform_3, window_bounds = array<i64: 16, 512>}]} {
    %c0_i32 = arith.constant 0 : i32
    %0 = arith.cmpi eq, %arg2, %c0_i32 : i32
    %1 = arith.extui %0 : i1 to i32
    %c0_i32_0 = arith.constant 0 : i32
    %2 = arith.cmpi ne, %1, %c0_i32_0 : i32
    scf.if %2 {
      %cst_17 = arith.constant 0.000000e+00 : f32
      %17 = vector.broadcast %cst_17 : f32 to vector<16x512xf32>
      %c0_18 = arith.constant 0 : index
      %c0_19 = arith.constant 0 : index
      %18 = vector.load %arg7[%c0_18, %c0_19] : memref<16x512xf32, #tpu.memory_space<vmem>>, vector<16x512xf32>
      tpu.vector_store %arg7[%c0_18, %c0_19], %17 {strides = array<i32>} : memref<16x512xf32, #tpu.memory_space<vmem>>, vector<16x512xf32>,
      %cst_20 = arith.constant 0.000000e+00 : f32
      %19 = vector.broadcast %cst_20 : f32 to vector<16x512xf32>
      %c0_21 = arith.constant 0 : index
      %c0_22 = arith.constant 0 : index
      %20 = vector.load %arg8[%c0_21, %c0_22] : memref<16x512xf32, #tpu.memory_space<vmem>>, vector<16x512xf32>
      tpu.vector_store %arg8[%c0_21, %c0_22], %19 {strides = array<i32>} : memref<16x512xf32, #tpu.memory_space<vmem>>, vector<16x512xf32>,
    } else {
    }
    %c0 = arith.constant 0 : index
    %c0_1 = arith.constant 0 : index
    %3 = vector.load %arg3[%c0, %c0_1] : memref<16x128xbf16, #tpu.memory_space<vmem>>, vector<16x128xbf16>
    %c0_2 = arith.constant 0 : index
    %c0_3 = arith.constant 0 : index
    %4 = vector.load %arg7[%c0_2, %c0_3] : memref<16x512xf32, #tpu.memory_space<vmem>>, vector<16x512xf32>
    %c0_4 = arith.constant 0 : index
    %c0_5 = arith.constant 0 : index
    %5 = vector.load %arg4[%c0_4, %c0_5] : memref<128x512xbf16, #tpu.memory_space<vmem>>, vector<128x512xbf16>
    %cst = arith.constant dense<0.000000e+00> : vector<16x512xf32>
    %6 = tpu.matmul %3, %5, %cst {dimension_numbers = #tpu.dot_dimension_numbers<[1], [0], [0], [1], [0, 0, 1, 1], [], []>} : vector<16x128xbf16>, vector<128x512xbf16>, vector<16x512xf32> -> vector<16x512xf32>
    %7 = arith.addf %4, %6 : vector<16x512xf32>
    %c0_6 = arith.constant 0 : index
    %c0_7 = arith.constant 0 : index
    %8 = vector.load %arg7[%c0_6, %c0_7] : memref<16x512xf32, #tpu.memory_space<vmem>>, vector<16x512xf32>
    tpu.vector_store %arg7[%c0_6, %c0_7], %7 {strides = array<i32>} : memref<16x512xf32, #tpu.memory_space<vmem>>, vector<16x512xf32>,
    %c0_8 = arith.constant 0 : index
    %c0_9 = arith.constant 0 : index
    %9 = vector.load %arg8[%c0_8, %c0_9] : memref<16x512xf32, #tpu.memory_space<vmem>>, vector<16x512xf32>
    %c0_10 = arith.constant 0 : index
    %c0_11 = arith.constant 0 : index
    %10 = vector.load %arg5[%c0_10, %c0_11] : memref<128x512xbf16, #tpu.memory_space<vmem>>, vector<128x512xbf16>
    %cst_12 = arith.constant dense<0.000000e+00> : vector<16x512xf32>
    %11 = tpu.matmul %3, %10, %cst_12 {dimension_numbers = #tpu.dot_dimension_numbers<[1], [0], [0], [1], [0, 0, 1, 1], [], []>} : vector<16x128xbf16>, vector<128x512xbf16>, vector<16x512xf32> -> vector<16x512xf32>
    %12 = arith.addf %9, %11 : vector<16x512xf32>
    %c0_13 = arith.constant 0 : index
    %c0_14 = arith.constant 0 : index
    %13 = vector.load %arg8[%c0_13, %c0_14] : memref<16x512xf32, #tpu.memory_space<vmem>>, vector<16x512xf32>
    tpu.vector_store %arg8[%c0_13, %c0_14], %12 {strides = array<i32>} : memref<16x512xf32, #tpu.memory_space<vmem>>, vector<16x512xf32>,
    %c0_i32_15 = arith.constant 0 : i32
    %14 = arith.cmpi eq, %arg2, %c0_i32_15 : i32
    %15 = arith.extui %14 : i1 to i32
    %c0_i32_16 = arith.constant 0 : i32
    %16 = arith.cmpi ne, %15, %c0_i32_16 : i32
    scf.if %16 {
      %c0_17 = arith.constant 0 : index
      %c0_18 = arith.constant 0 : index
      %17 = vector.load %arg7[%c0_17, %c0_18] : memref<16x512xf32, #tpu.memory_space<vmem>>, vector<16x512xf32>
      %c0_19 = arith.constant 0 : index
      %c0_20 = arith.constant 0 : index
      %18 = vector.load %arg8[%c0_19, %c0_20] : memref<16x512xf32, #tpu.memory_space<vmem>>, vector<16x512xf32>
      %19 = arith.negf %17 : vector<16x512xf32>
      %20 = math.exp %19 : vector<16x512xf32>
      %cst_21 = arith.constant 1.000000e+00 : f32
      %21 = vector.broadcast %cst_21 : f32 to vector<16x512xf32>
      %22 = arith.addf %21, %20 : vector<16x512xf32>
      %23 = arith.divf %21, %22 : vector<16x512xf32>
      %24 = arith.mulf %17, %23 : vector<16x512xf32>
      %25 = arith.mulf %24, %18 : vector<16x512xf32>
      %26 = arith.truncf %25 : vector<16x512xf32> to vector<16x512xbf16>
      %c0_22 = arith.constant 0 : index
      %c0_23 = arith.constant 0 : index
      %27 = vector.load %arg6[%c0_22, %c0_23] : memref<16x512xbf16, #tpu.memory_space<vmem>>, vector<16x512xbf16>
      tpu.vector_store %arg6[%c0_22, %c0_23], %26 {strides = array<i32>} : memref<16x512xbf16, #tpu.memory_space<vmem>>, vector<16x512xbf16>,
    } else {
    }
    return
  }
  func.func @transform_0(%arg0: i32, %arg1: i32, %arg2: i32) -> (i32, i32) {
    %c0_i32 = arith.constant 0 : i32
    return %arg0, %arg2 : i32, i32
  }
  func.func @transform_1(%arg0: i32, %arg1: i32, %arg2: i32) -> (i32, i32) {
    %c0_i32 = arith.constant 0 : i32
    return %arg2, %arg1 : i32, i32
  }
  func.func @transform_2(%arg0: i32, %arg1: i32, %arg2: i32) -> (i32, i32) {
    %c0_i32 = arith.constant 0 : i32
    return %arg2, %arg1 : i32, i32
  }
  func.func @transform_3(%arg0: i32, %arg1: i32, %arg2: i32) -> (i32, i32) {
    %c0_i32 = arith.constant 0 : i32
    return %arg0, %arg1 : i32, i32
  }
}

module attributes {stable_mosaic.version = 11 : i64} {
  func.func @_matmul_res_kernel(%arg0: i32, %arg1: i32, %arg2: i32, %arg3: memref<16x128xbf16, #tpu.memory_space<vmem>>, %arg4: memref<128x128xbf16, #tpu.memory_space<vmem>>, %arg5: memref<16x128xf32, #tpu.memory_space<vmem>>, %arg6: memref<16x128xf32, #tpu.memory_space<vmem>>, %arg7: memref<16x128xf32, #tpu.memory_space<vmem>>) attributes {dimension_semantics = [#tpu.dimension_semantics<parallel>, #tpu.dimension_semantics<parallel>, #tpu.dimension_semantics<arbitrary>], iteration_bounds = array<i64: 1, 1, 1>, scalar_prefetch = 0 : i64, scratch_operands = 1 : i64, tpu.core_type = #tpu.core_type<tc>, window_params = [{transform_indices = @transform_0, window_bounds = array<i64: 16, 128>}, {transform_indices = @transform_1, window_bounds = array<i64: 128, 128>}, {transform_indices = @transform_2, window_bounds = array<i64: 16, 128>}, {transform_indices = @transform_3, window_bounds = array<i64: 16, 128>}]} {
    %c0_i32 = arith.constant 0 : i32
    %0 = arith.cmpi eq, %arg2, %c0_i32 : i32
    %1 = arith.extui %0 : i1 to i32
    %c0_i32_0 = arith.constant 0 : i32
    %2 = arith.cmpi ne, %1, %c0_i32_0 : i32
    scf.if %2 {
      %cst_10 = arith.constant 0.000000e+00 : f32
      %12 = vector.broadcast %cst_10 : f32 to vector<16x128xf32>
      %c0_11 = arith.constant 0 : index
      %c0_12 = arith.constant 0 : index
      %13 = vector.load %arg7[%c0_11, %c0_12] : memref<16x128xf32, #tpu.memory_space<vmem>>, vector<16x128xf32>
      tpu.vector_store %arg7[%c0_11, %c0_12], %12 {strides = array<i32>} : memref<16x128xf32, #tpu.memory_space<vmem>>, vector<16x128xf32>,
    } else {
    }
    %c0 = arith.constant 0 : index
    %c0_1 = arith.constant 0 : index
    %3 = vector.load %arg7[%c0, %c0_1] : memref<16x128xf32, #tpu.memory_space<vmem>>, vector<16x128xf32>
    %c0_2 = arith.constant 0 : index
    %c0_3 = arith.constant 0 : index
    %4 = vector.load %arg3[%c0_2, %c0_3] : memref<16x128xbf16, #tpu.memory_space<vmem>>, vector<16x128xbf16>
    %c0_4 = arith.constant 0 : index
    %c0_5 = arith.constant 0 : index
    %5 = vector.load %arg4[%c0_4, %c0_5] : memref<128x128xbf16, #tpu.memory_space<vmem>>, vector<128x128xbf16>
    %cst = arith.constant dense<0.000000e+00> : vector<16x128xf32>
    %6 = tpu.matmul %4, %5, %cst {dimension_numbers = #tpu.dot_dimension_numbers<[1], [0], [0], [1], [0, 0, 1, 1], [], []>} : vector<16x128xbf16>, vector<128x128xbf16>, vector<16x128xf32> -> vector<16x128xf32>
    %7 = arith.addf %3, %6 : vector<16x128xf32>
    %c0_6 = arith.constant 0 : index
    %c0_7 = arith.constant 0 : index
    %8 = vector.load %arg7[%c0_6, %c0_7] : memref<16x128xf32, #tpu.memory_space<vmem>>, vector<16x128xf32>
    tpu.vector_store %arg7[%c0_6, %c0_7], %7 {strides = array<i32>} : memref<16x128xf32, #tpu.memory_space<vmem>>, vector<16x128xf32>,
    %c0_i32_8 = arith.constant 0 : i32
    %9 = arith.cmpi eq, %arg2, %c0_i32_8 : i32
    %10 = arith.extui %9 : i1 to i32
    %c0_i32_9 = arith.constant 0 : i32
    %11 = arith.cmpi ne, %10, %c0_i32_9 : i32
    scf.if %11 {
      %c0_10 = arith.constant 0 : index
      %c0_11 = arith.constant 0 : index
      %12 = vector.load %arg7[%c0_10, %c0_11] : memref<16x128xf32, #tpu.memory_space<vmem>>, vector<16x128xf32>
      %c0_12 = arith.constant 0 : index
      %c0_13 = arith.constant 0 : index
      %13 = vector.load %arg5[%c0_12, %c0_13] : memref<16x128xf32, #tpu.memory_space<vmem>>, vector<16x128xf32>
      %14 = arith.addf %12, %13 : vector<16x128xf32>
      %c0_14 = arith.constant 0 : index
      %c0_15 = arith.constant 0 : index
      %15 = vector.load %arg6[%c0_14, %c0_15] : memref<16x128xf32, #tpu.memory_space<vmem>>, vector<16x128xf32>
      tpu.vector_store %arg6[%c0_14, %c0_15], %14 {strides = array<i32>} : memref<16x128xf32, #tpu.memory_space<vmem>>, vector<16x128xf32>,
    } else {
    }
    return
  }
  func.func @transform_0(%arg0: i32, %arg1: i32, %arg2: i32) -> (i32, i32) {
    %c0_i32 = arith.constant 0 : i32
    return %arg0, %arg2 : i32, i32
  }
  func.func @transform_1(%arg0: i32, %arg1: i32, %arg2: i32) -> (i32, i32) {
    %c0_i32 = arith.constant 0 : i32
    return %arg2, %arg1 : i32, i32
  }
  func.func @transform_2(%arg0: i32, %arg1: i32, %arg2: i32) -> (i32, i32) {
    %c0_i32 = arith.constant 0 : i32
    return %arg0, %arg1 : i32, i32
  }
  func.func @transform_3(%arg0: i32, %arg1: i32, %arg2: i32) -> (i32, i32) {
    %c0_i32 = arith.constant 0 : i32
    return %arg0, %arg1 : i32, i32
  }
}

module attributes {stable_mosaic.version = 11 : i64} {
  func.func @_matmul_res_kernel(%arg0: i32, %arg1: i32, %arg2: i32, %arg3: memref<16x512xbf16, #tpu.memory_space<vmem>>, %arg4: memref<512x128xbf16, #tpu.memory_space<vmem>>, %arg5: memref<16x128xf32, #tpu.memory_space<vmem>>, %arg6: memref<16x128xf32, #tpu.memory_space<vmem>>, %arg7: memref<16x128xf32, #tpu.memory_space<vmem>>) attributes {dimension_semantics = [#tpu.dimension_semantics<parallel>, #tpu.dimension_semantics<parallel>, #tpu.dimension_semantics<arbitrary>], iteration_bounds = array<i64: 1, 1, 1>, scalar_prefetch = 0 : i64, scratch_operands = 1 : i64, tpu.core_type = #tpu.core_type<tc>, window_params = [{transform_indices = @transform_0, window_bounds = array<i64: 16, 512>}, {transform_indices = @transform_1, window_bounds = array<i64: 512, 128>}, {transform_indices = @transform_2, window_bounds = array<i64: 16, 128>}, {transform_indices = @transform_3, window_bounds = array<i64: 16, 128>}]} {
    %c0_i32 = arith.constant 0 : i32
    %0 = arith.cmpi eq, %arg2, %c0_i32 : i32
    %1 = arith.extui %0 : i1 to i32
    %c0_i32_0 = arith.constant 0 : i32
    %2 = arith.cmpi ne, %1, %c0_i32_0 : i32
    scf.if %2 {
      %cst_10 = arith.constant 0.000000e+00 : f32
      %12 = vector.broadcast %cst_10 : f32 to vector<16x128xf32>
      %c0_11 = arith.constant 0 : index
      %c0_12 = arith.constant 0 : index
      %13 = vector.load %arg7[%c0_11, %c0_12] : memref<16x128xf32, #tpu.memory_space<vmem>>, vector<16x128xf32>
      tpu.vector_store %arg7[%c0_11, %c0_12], %12 {strides = array<i32>} : memref<16x128xf32, #tpu.memory_space<vmem>>, vector<16x128xf32>,
    } else {
    }
    %c0 = arith.constant 0 : index
    %c0_1 = arith.constant 0 : index
    %3 = vector.load %arg7[%c0, %c0_1] : memref<16x128xf32, #tpu.memory_space<vmem>>, vector<16x128xf32>
    %c0_2 = arith.constant 0 : index
    %c0_3 = arith.constant 0 : index
    %4 = vector.load %arg3[%c0_2, %c0_3] : memref<16x512xbf16, #tpu.memory_space<vmem>>, vector<16x512xbf16>
    %c0_4 = arith.constant 0 : index
    %c0_5 = arith.constant 0 : index
    %5 = vector.load %arg4[%c0_4, %c0_5] : memref<512x128xbf16, #tpu.memory_space<vmem>>, vector<512x128xbf16>
    %cst = arith.constant dense<0.000000e+00> : vector<16x128xf32>
    %6 = tpu.matmul %4, %5, %cst {dimension_numbers = #tpu.dot_dimension_numbers<[1], [0], [0], [1], [0, 0, 1, 1], [], []>} : vector<16x512xbf16>, vector<512x128xbf16>, vector<16x128xf32> -> vector<16x128xf32>
    %7 = arith.addf %3, %6 : vector<16x128xf32>
    %c0_6 = arith.constant 0 : index
    %c0_7 = arith.constant 0 : index
    %8 = vector.load %arg7[%c0_6, %c0_7] : memref<16x128xf32, #tpu.memory_space<vmem>>, vector<16x128xf32>
    tpu.vector_store %arg7[%c0_6, %c0_7], %7 {strides = array<i32>} : memref<16x128xf32, #tpu.memory_space<vmem>>, vector<16x128xf32>,
    %c0_i32_8 = arith.constant 0 : i32
    %9 = arith.cmpi eq, %arg2, %c0_i32_8 : i32
    %10 = arith.extui %9 : i1 to i32
    %c0_i32_9 = arith.constant 0 : i32
    %11 = arith.cmpi ne, %10, %c0_i32_9 : i32
    scf.if %11 {
      %c0_10 = arith.constant 0 : index
      %c0_11 = arith.constant 0 : index
      %12 = vector.load %arg7[%c0_10, %c0_11] : memref<16x128xf32, #tpu.memory_space<vmem>>, vector<16x128xf32>
      %c0_12 = arith.constant 0 : index
      %c0_13 = arith.constant 0 : index
      %13 = vector.load %arg5[%c0_12, %c0_13] : memref<16x128xf32, #tpu.memory_space<vmem>>, vector<16x128xf32>
      %14 = arith.addf %12, %13 : vector<16x128xf32>
      %c0_14 = arith.constant 0 : index
      %c0_15 = arith.constant 0 : index
      %15 = vector.load %arg6[%c0_14, %c0_15] : memref<16x128xf32, #tpu.memory_space<vmem>>, vector<16x128xf32>
      tpu.vector_store %arg6[%c0_14, %c0_15], %14 {strides = array<i32>} : memref<16x128xf32, #tpu.memory_space<vmem>>, vector<16x128xf32>,
    } else {
    }
    return
  }
  func.func @transform_0(%arg0: i32, %arg1: i32, %arg2: i32) -> (i32, i32) {
    %c0_i32 = arith.constant 0 : i32
    return %arg0, %arg2 : i32, i32
  }
  func.func @transform_1(%arg0: i32, %arg1: i32, %arg2: i32) -> (i32, i32) {
    %c0_i32 = arith.constant 0 : i32
    return %arg2, %arg1 : i32, i32
  }
  func.func @transform_2(%arg0: i32, %arg1: i32, %arg2: i32) -> (i32, i32) {
    %c0_i32 = arith.constant 0 : i32
    return %arg0, %arg1 : i32, i32
  }
  func.func @transform_3(%arg0: i32, %arg1: i32, %arg2: i32) -> (i32, i32) {
    %c0_i32 = arith.constant 0 : i32
    return %arg0, %arg1 : i32, i32
  }
}

module attributes {stable_mosaic.version = 11 : i64} {
  func.func @_matmul_res_kernel(%arg0: i32, %arg1: i32, %arg2: i32, %arg3: memref<16x512xbf16, #tpu.memory_space<vmem>>, %arg4: memref<512x128xbf16, #tpu.memory_space<vmem>>, %arg5: memref<16x128xf32, #tpu.memory_space<vmem>>, %arg6: memref<16x128xf32, #tpu.memory_space<vmem>>, %arg7: memref<16x128xf32, #tpu.memory_space<vmem>>) attributes {dimension_semantics = [#tpu.dimension_semantics<parallel>, #tpu.dimension_semantics<parallel>, #tpu.dimension_semantics<arbitrary>], iteration_bounds = array<i64: 1, 1, 1>, scalar_prefetch = 0 : i64, scratch_operands = 1 : i64, tpu.core_type = #tpu.core_type<tc>, window_params = [{transform_indices = @transform_0, window_bounds = array<i64: 16, 512>}, {transform_indices = @transform_1, window_bounds = array<i64: 512, 128>}, {transform_indices = @transform_2, window_bounds = array<i64: 16, 128>}, {transform_indices = @transform_3, window_bounds = array<i64: 16, 128>}]} {
    %c0_i32 = arith.constant 0 : i32
    %0 = arith.cmpi eq, %arg2, %c0_i32 : i32
    %1 = arith.extui %0 : i1 to i32
    %c0_i32_0 = arith.constant 0 : i32
    %2 = arith.cmpi ne, %1, %c0_i32_0 : i32
    scf.if %2 {
      %cst_10 = arith.constant 0.000000e+00 : f32
      %12 = vector.broadcast %cst_10 : f32 to vector<16x128xf32>
      %c0_11 = arith.constant 0 : index
      %c0_12 = arith.constant 0 : index
      %13 = vector.load %arg7[%c0_11, %c0_12] : memref<16x128xf32, #tpu.memory_space<vmem>>, vector<16x128xf32>
      tpu.vector_store %arg7[%c0_11, %c0_12], %12 {strides = array<i32>} : memref<16x128xf32, #tpu.memory_space<vmem>>, vector<16x128xf32>,
    } else {
    }
    %c0 = arith.constant 0 : index
    %c0_1 = arith.constant 0 : index
    %3 = vector.load %arg7[%c0, %c0_1] : memref<16x128xf32, #tpu.memory_space<vmem>>, vector<16x128xf32>
    %c0_2 = arith.constant 0 : index
    %c0_3 = arith.constant 0 : index
    %4 = vector.load %arg3[%c0_2, %c0_3] : memref<16x512xbf16, #tpu.memory_space<vmem>>, vector<16x512xbf16>
    %c0_4 = arith.constant 0 : index
    %c0_5 = arith.constant 0 : index
    %5 = vector.load %arg4[%c0_4, %c0_5] : memref<512x128xbf16, #tpu.memory_space<vmem>>, vector<512x128xbf16>
    %cst = arith.constant dense<0.000000e+00> : vector<16x128xf32>
    %6 = tpu.matmul %4, %5, %cst {dimension_numbers = #tpu.dot_dimension_numbers<[1], [0], [0], [1], [0, 0, 1, 1], [], []>} : vector<16x512xbf16>, vector<512x128xbf16>, vector<16x128xf32> -> vector<16x128xf32>
    %7 = arith.addf %3, %6 : vector<16x128xf32>
    %c0_6 = arith.constant 0 : index
    %c0_7 = arith.constant 0 : index
    %8 = vector.load %arg7[%c0_6, %c0_7] : memref<16x128xf32, #tpu.memory_space<vmem>>, vector<16x128xf32>
    tpu.vector_store %arg7[%c0_6, %c0_7], %7 {strides = array<i32>} : memref<16x128xf32, #tpu.memory_space<vmem>>, vector<16x128xf32>,
    %c0_i32_8 = arith.constant 0 : i32
    %9 = arith.cmpi eq, %arg2, %c0_i32_8 : i32
    %10 = arith.extui %9 : i1 to i32
    %c0_i32_9 = arith.constant 0 : i32
    %11 = arith.cmpi ne, %10, %c0_i32_9 : i32
    scf.if %11 {
      %c0_10 = arith.constant 0 : index
      %c0_11 = arith.constant 0 : index
      %12 = vector.load %arg7[%c0_10, %c0_11] : memref<16x128xf32, #tpu.memory_space<vmem>>, vector<16x128xf32>
      %c0_12 = arith.constant 0 : index
      %c0_13 = arith.constant 0 : index
      %13 = vector.load %arg5[%c0_12, %c0_13] : memref<16x128xf32, #tpu.memory_space<vmem>>, vector<16x128xf32>
      %14 = arith.addf %12, %13 : vector<16x128xf32>
      %c0_14 = arith.constant 0 : index
      %c0_15 = arith.constant 0 : index
      %15 = vector.load %arg6[%c0_14, %c0_15] : memref<16x128xf32, #tpu.memory_space<vmem>>, vector<16x128xf32>
      tpu.vector_store %arg6[%c0_14, %c0_15], %14 {strides = array<i32>} : memref<16x128xf32, #tpu.memory_space<vmem>>, vector<16x128xf32>,
    } else {
    }
    return
  }
  func.func @transform_0(%arg0: i32, %arg1: i32, %arg2: i32) -> (i32, i32) {
    %c0_i32 = arith.constant 0 : i32
    return %arg0, %arg2 : i32, i32
  }
  func.func @transform_1(%arg0: i32, %arg1: i32, %arg2: i32) -> (i32, i32) {
    %c0_i32 = arith.constant 0 : i32
    return %arg2, %arg1 : i32, i32
  }
  func.func @transform_2(%arg0: i32, %arg1: i32, %arg2: i32) -> (i32, i32) {
    %c0_i32 = arith.constant 0 : i32
    return %arg0, %arg1 : i32, i32
  }
  func.func @transform_3(%arg0: i32, %arg1: i32, %arg2: i32) -> (i32, i32) {
    %c0_i32 = arith.constant 0 : i32
    return %arg0, %arg1 : i32, i32
  }
}

module attributes {stable_mosaic.version = 11 : i64} {
  func.func @_matmul_kernel(%arg0: i32, %arg1: i32, %arg2: i32, %arg3: memref<16x128xbf16, #tpu.memory_space<vmem>>, %arg4: memref<128x128xbf16, #tpu.memory_space<vmem>>, %arg5: memref<16x128xf32, #tpu.memory_space<vmem>>, %arg6: memref<16x128xf32, #tpu.memory_space<vmem>>) attributes {dimension_semantics = [#tpu.dimension_semantics<parallel>, #tpu.dimension_semantics<parallel>, #tpu.dimension_semantics<arbitrary>], iteration_bounds = array<i64: 1, 1, 1>, scalar_prefetch = 0 : i64, scratch_operands = 1 : i64, tpu.core_type = #tpu.core_type<tc>, window_params = [{transform_indices = @transform_0, window_bounds = array<i64: 16, 128>}, {transform_indices = @transform_1, window_bounds = array<i64: 128, 128>}, {transform_indices = @transform_2, window_bounds = array<i64: 16, 128>}]} {
    %c0_i32 = arith.constant 0 : i32
    %0 = arith.cmpi eq, %arg2, %c0_i32 : i32
    %1 = arith.extui %0 : i1 to i32
    %c0_i32_0 = arith.constant 0 : i32
    %2 = arith.cmpi ne, %1, %c0_i32_0 : i32
    scf.if %2 {
      %cst_10 = arith.constant 0.000000e+00 : f32
      %12 = vector.broadcast %cst_10 : f32 to vector<16x128xf32>
      %c0_11 = arith.constant 0 : index
      %c0_12 = arith.constant 0 : index
      %13 = vector.load %arg6[%c0_11, %c0_12] : memref<16x128xf32, #tpu.memory_space<vmem>>, vector<16x128xf32>
      tpu.vector_store %arg6[%c0_11, %c0_12], %12 {strides = array<i32>} : memref<16x128xf32, #tpu.memory_space<vmem>>, vector<16x128xf32>,
    } else {
    }
    %c0 = arith.constant 0 : index
    %c0_1 = arith.constant 0 : index
    %3 = vector.load %arg6[%c0, %c0_1] : memref<16x128xf32, #tpu.memory_space<vmem>>, vector<16x128xf32>
    %c0_2 = arith.constant 0 : index
    %c0_3 = arith.constant 0 : index
    %4 = vector.load %arg3[%c0_2, %c0_3] : memref<16x128xbf16, #tpu.memory_space<vmem>>, vector<16x128xbf16>
    %c0_4 = arith.constant 0 : index
    %c0_5 = arith.constant 0 : index
    %5 = vector.load %arg4[%c0_4, %c0_5] : memref<128x128xbf16, #tpu.memory_space<vmem>>, vector<128x128xbf16>
    %cst = arith.constant dense<0.000000e+00> : vector<16x128xf32>
    %6 = tpu.matmul %4, %5, %cst {dimension_numbers = #tpu.dot_dimension_numbers<[1], [0], [0], [1], [0, 0, 1, 1], [], []>} : vector<16x128xbf16>, vector<128x128xbf16>, vector<16x128xf32> -> vector<16x128xf32>
    %7 = arith.addf %3, %6 : vector<16x128xf32>
    %c0_6 = arith.constant 0 : index
    %c0_7 = arith.constant 0 : index
    %8 = vector.load %arg6[%c0_6, %c0_7] : memref<16x128xf32, #tpu.memory_space<vmem>>, vector<16x128xf32>
    tpu.vector_store %arg6[%c0_6, %c0_7], %7 {strides = array<i32>} : memref<16x128xf32, #tpu.memory_space<vmem>>, vector<16x128xf32>,
    %c0_i32_8 = arith.constant 0 : i32
    %9 = arith.cmpi eq, %arg2, %c0_i32_8 : i32
    %10 = arith.extui %9 : i1 to i32
    %c0_i32_9 = arith.constant 0 : i32
    %11 = arith.cmpi ne, %10, %c0_i32_9 : i32
    scf.if %11 {
      %c0_10 = arith.constant 0 : index
      %c0_11 = arith.constant 0 : index
      %12 = vector.load %arg6[%c0_10, %c0_11] : memref<16x128xf32, #tpu.memory_space<vmem>>, vector<16x128xf32>
      %c0_12 = arith.constant 0 : index
      %c0_13 = arith.constant 0 : index
      %13 = vector.load %arg5[%c0_12, %c0_13] : memref<16x128xf32, #tpu.memory_space<vmem>>, vector<16x128xf32>
      tpu.vector_store %arg5[%c0_12, %c0_13], %12 {strides = array<i32>} : memref<16x128xf32, #tpu.memory_space<vmem>>, vector<16x128xf32>,
    } else {
    }
    return
  }
  func.func @transform_0(%arg0: i32, %arg1: i32, %arg2: i32) -> (i32, i32) {
    %c0_i32 = arith.constant 0 : i32
    return %arg0, %arg2 : i32, i32
  }
  func.func @transform_1(%arg0: i32, %arg1: i32, %arg2: i32) -> (i32, i32) {
    %c0_i32 = arith.constant 0 : i32
    return %arg2, %arg1 : i32, i32
  }
  func.func @transform_2(%arg0: i32, %arg1: i32, %arg2: i32) -> (i32, i32) {
    %c0_i32 = arith.constant 0 : i32
    return %arg0, %arg1 : i32, i32
  }
}

</mosaic_0001>

<bundles_post_ra>
// kernel: _lambda_.20
= control target key start
LH: loop header
LB: loop body
LE: loop exit
PB: predicated region body
PF: predicated region fallthrough
CT: control target
= control target key end

     0   :  { %v79_v4 = vmov 128.0   ;;  %s107_s0 = inlined_call_operand.vmem [shape: f32[16,128], index: 0, kind: input, shape index: {}]   ;;  %s108_s1 = inlined_call_operand.vmem [shape: f32[1,128], index: 1, kind: input, shape index: {}]   ;;  %s109_s2 = inlined_call_operand.vmem [shape: bf16[16,128], index: 2, kind: output, shape index: {}]  }
   0x1   :  { %v11_v0 = vld [vmem:[%s107_s0] sm:$0xff]  ;;  %v12_v2 = vld [vmem:[%s107_s0 + $0x8] sm:$0xff]  ;;  %73 = vrcp.f32 %v79_v4 }
   0x2   :  { %v13_v1 = vmul.f32 %v11_v0, %v11_v0  ;;  %v14_v3 = vmul.f32 %v12_v2, %v12_v2  ;;  %v72_v30 = vld [vmem:[%s108_s1] ss:$0 sm:$0xff] }
   0x4   :  { %15 = vadd.xlane.f32.xlu0 %v13_v1 }
   0x7   :  { %v74_v5 = vpop.eup %73 }
   0x8   :  { %v20_v6 = vmul.f32 128.0, %v74_v5  ;;  %vm24_vm0 = vweird.f32 %v74_v5 }
   0xa   :  { %v21_v7 = vsub.f32 1.0, %v20_v6 }
   0xc   :  { %17 = vadd.xlane.f32.xlu0 %v14_v3  ;;  %v22_v8 = vmul.f32 %v74_v5, %v21_v7 }
   0xe   :  { %v23_v9 = vadd.f32 %v74_v5, %v22_v8 }
  0x10   :  { %v25_v10 = vsel %vm24_vm0, %v74_v5, %v23_v9 }
  0x77   :  { %v16_v11 = vpop.xlane.xlu0 %15 }
  0x78   :  { %v26_v12 = vmul.f32 %v25_v10, %v16_v11 }
  0x7a   :  { %v28_v13 = vadd.f32 1e-05, %v26_v12 }
  0x7c   :  { %75 = vrsqrt.f32 %v28_v13  ;;  %vm36_vm2 = vweird.f32 %v28_v13 }
  0x7f   :  { %v18_v14 = vpop.xlane.xlu0 %17 }
  0x80   :  { %v27_v15 = vmul.f32 %v25_v10, %v18_v14 }
  0x82   :  { %v76_v16 = vpop.eup %75  ;;  %v29_v17 = vadd.f32 1e-05, %v27_v15 }
  0x83   :  { %v31_v18 = vmul.f32 %v76_v16, %v28_v13  ;;  %vm37_vm1 = vweird.f32 %v76_v16 }
  0x84   :  { %77 = vrsqrt.f32 %v29_v17  ;;  %vm38_vm3 = vmor %vm36_vm2, %vm37_vm1  ;;  %vm46_vm5 = vweird.f32 %v29_v17 }
  0x85   :  { %v32_v19 = vmul.f32 %v76_v16, %v31_v18 }
  0x87   :  { %v33_v20 = vmul.f32 0.5, %v32_v19 }
  0x89   :  { %v34_v21 = vsub.f32 1.5, %v33_v20 }
  0x8a   :  { %v78_v22 = vpop.eup %77 }
  0x8b   :  { %v41_v23 = vmul.f32 %v78_v22, %v29_v17  ;;  %v35_v24 = vmul.f32 %v76_v16, %v34_v21  ;;  %vm47_vm4 = vweird.f32 %v78_v22 }
  0x8c   :  { %vm48_vm6 = vmor %vm46_vm5, %vm47_vm4 }
  0x8d   :  { %v42_v25 = vmul.f32 %v78_v22, %v41_v23  ;;  %v39_v27 = vsel %vm38_vm3, %v76_v16, %v35_v24 }
  0x8e   :  { %v50_v31 = vmul.f32 %v39_v27, %v11_v0 }
  0x8f   :  { %v43_v26 = vmul.f32 0.5, %v42_v25 }
  0x90   :  { %v56_v34 = vmul.f32 %v72_v30, %v50_v31 }
  0x91   :  { %v44_v28 = vsub.f32 1.5, %v43_v26 }
  0x93   :  { %v45_v29 = vmul.f32 %v78_v22, %v44_v28 }
  0x95   :  { %v49_v32 = vsel %vm48_vm6, %v78_v22, %v45_v29 }
  0x96   :  { %v51_v33 = vmul.f32 %v49_v32, %v12_v2 }
  0x98   :  { %v57_v35 = vmul.f32 %v72_v30, %v51_v33 }
  0x9a   :  { %v69_v36 = vpack.c.bf16 %v57_v35, %v56_v34 }
  0x9c   :  { %70 = vst [vmem:[%s109_s2] sm:$0xff] %v69_v36  }

// kernel: _lambda_.23
= control target key start
LH: loop header
LB: loop body
LE: loop exit
PB: predicated region body
PF: predicated region fallthrough
CT: control target
= control target key end

     0   :  { %s531_s12 = smov 0   ;;  %s533_s13 = smov 0   ;;  %s588_s0 = inlined_call_operand.vmem [shape: bf16[2,4,8,32], index: 0, kind: input, shape index: {}]   ;;  %s589_s1 = inlined_call_operand.vmem [shape: f32[8,32], index: 1, kind: input, shape index: {}]   ;;  %s590_s2 = inlined_call_operand.vmem [shape: f32[8,32], index: 2, kind: input, shape index: {}]   ;;  %s591_s3 = inlined_call_operand.vmem [shape: bf16[2,4,8,32], index: 3, kind: output, shape index: {}]  }
   0x1   :  { %s535_s14 = smov 0   ;;  %s537_s15 = smov 0  }
   0x2   :  { %s539_s16 = smov 0  }
   0x3 LB: > { %s28_s17 = sadd.s32 1, %s499_s14  ;;  %s32_s18 = sadd.s32 1, %s503_s15  ;;  %s507_s16 = sphi %s539_s16, %s13_s16   ;;  %s503_s15 = sphi %s537_s15, %s595_s15   ;;  %s499_s14 = sphi %s535_s14, %s594_s14   ;;  %s495_s13 = sphi %s533_s13, %s593_s13   ;;  %s491_s12 = sphi %s531_s12, %s592_s12  }
   0x4   : > { %p30_p0 = scmp.ge.s32.totalorder %s28_s17, 4  ;;  %p420_p1 = scmp.ge.s32.totalorder %s507_s16, 1 }
   0x5   : > { %p188_p2 = scmp.lt.s32.totalorder %s507_s16, 9 }
   0x6   : > { %s597_s17 = smov (%p30_p0, %s28_s17), 0  ;;  %s599_s18 = smov (!%p30_p0, %s32_s18), %s503_s15 }
   0x7   : > { %p189_p3 = pnand %p420_p1, %p188_p2  ;;  %p34_p4 = scmp.ge.s32.totalorder %s599_s18, 2 }
   0x8   : > { %p232_p5 = scmp.lt.s32.totalorder (!%p189_p3), %s495_s13, 1  ;;  %p234_p6 = scmp.lt.s32.totalorder (!%p189_p3), %s491_s12, 3 }
   0x9   : > { %s601_s18 = smov (%p34_p4, %s599_s18), 0  ;;  %192 = sbr.rel (%p189_p3) target bundleno = 153 (0x99), region = 32 }
   0xa   : > { %s509_s25 = smov (!%p189_p3), 112   ;;  %s510_s26 = smov (!%p189_p3), 16  }
   0xe   : > { %s603_s13 = smov (!%p232_p5, %s495_s13), 1  ;;  %s605_s12 = smov (!%p234_p6, %s491_s12), 3  ;;  %v273_v3 = vld [vmem:[%s589_s1] sm:$0xff]  ;;  %vm271_vm0 = vcmask 130048   ;;  %vm279_vm1 = vcmask 257024  }
   0xf   : > { %s421_s19 = sshll.u32 %s603_s13, 2  ;;  %v275_v4 = vld [vmem:[%s590_s2] sm:$0xff] }
  0x10   : > { %s240_s20 = sadd.s32 %s421_s19, %s605_s12 }
  0x11   : > { %s422_s21 = sshll.u32 %s240_s20, 2 }
  0x12   : > { %s242_s24 = scalar_lea.vmem %s588_s0, %s422_s21  ;;  %s261_s6 = scalar_lea.vmem %s591_s3, %s422_s21 }
  0x13   : > { %v262_v0 = vld [vmem:[%s242_s24] sm:$0xf] }
  0x14   : > { %v263_v1 = vunpack.c.l.bf16 %v262_v0 }
  0x16   : > { %265 = vrot.lane.b32.xlu0 %v263_v1, %s509_s25  ;;  %v274_v6 = vmul.f32 %v273_v3, %v263_v1 }
  0x1e   : > { %268 = vrot.lane.b32.xlu0 %v263_v1, %s510_s26 }
  0x88   : > { %v266_v2 = vpop.permute.xlu0 %265 }
  0x90   : > { %v269_v5 = vpop.permute.xlu0 %268 }
  0x91   : > { %v272_v7 = vsel %vm271_vm0, %v266_v2, %v269_v5 }
  0x92   : > { %v276_v8 = vmul.f32 %v275_v4, %v272_v7 }
  0x94   : > { %v277_v9 = vadd.f32 %v276_v8, %v274_v6 }
  0x96   : > { %v278_v10 = vpack.c.bf16 %v277_v9, %v277_v9 }
  0x98   : > { %280 = vst.msk [vmem:[%s261_s6] sm:$0xf] %vm279_vm1, %v278_v10 }
  0x99 PF: > { %s13_s16 = sadd.s32 1, %s507_s16   ;;  %s592_s12 = smov %s499_s14 }
  0x9a   : > { %p10_p7 = scmp.ge.s32.totalorder %s13_s16, 10   ;;  %s593_s13 = smov %s503_s15 }
  0x9b   : > { %s594_s14 = smov %s597_s17  ;;  %s595_s15 = smov %s601_s18 }
  0x9c   :  { %12 = sbr.rel (!%p10_p7) target bundleno = 3 (0x3), region = 68 }

// kernel: _lambda_.21
= control target key start
LH: loop header
LB: loop body
LE: loop exit
PB: predicated region body
PF: predicated region fallthrough
CT: control target
= control target key end

     0   :  { %7 = vsyncpa [#allocation4], 0  ;;  %s441_s12 = smov [#allocation3]   ;;  %s442_s14 = smov 192   ;;  %s477_s0 = inlined_call_operand.vmem [shape: bf16[16,128], index: 0, kind: input, shape index: {}]   ;;  %s478_s1 = inlined_call_operand.hbm [shape: bf16[128,384], index: 1, kind: input, shape index: {}]   ;;  %s479_s2 = inlined_call_operand.vmem [shape: bf16[16,384], index: 2, kind: output, shape index: {}]  }
   0x1   :  { %s14_s11 = sshll.u32 %s478_s1, 4  ;;  %s16_s13 = sshll.u32 %s441_s12, 4  ;;  %s15_s11 = int_to_ptr.hbm [resolvable:$true] %s14_s11  ;;  %s17_s13 = int_to_ptr.vmem [resolvable:$true] %s16_s13 }
   0x2   :  { %s443_s15 = smov 12  }
   0x3   :  { %22 = dma.hbm_to_vmem [thread:$0]  %s15_s11, 3072, %s17_s13, [#allocation4], %s442_s14, %s442_s14, %s443_s15  }
   0x4   :  { %439 = dma.done.wait [#allocation4], 3072  }
   0x5   :  { %440 = vsyncadd [#allocation4], 4294964224  ;;  %v377_v0 = vld [vmem:[#allocation3 + $0xa8] sm:$0xf]  ;;  %v410_v1 = vld [vmem:[#allocation3 + $0xb0] sm:$0xf0] }
   0x6   :  { %v409_v2 = vld [vmem:[#allocation3 + $0xac] sm:$0xf]  ;;  %v378_v3 = vor.u32 %v410_v1, %v377_v0  ;;  %v379_v4 = vld [vmem:[#allocation3 + $0xb4] sm:$0xf0]  ;;  %v385_v5 = vld [vmem:[#allocation3 + $0xb0] sm:$0xf] }
   0x7   :  { %v411_v6 = vld [vmem:[#allocation3 + $0xb8] sm:$0xf0]  ;;  %v382_v7 = vor.u32 %v409_v2, %v379_v4  ;;  %v365_v9 = vld [vmem:[#allocation3 + $0x90] sm:$0xf]  ;;  %v406_v11 = vld [vmem:[#allocation3 + $0x94] sm:$0xf] }
   0x8   :  { %v386_v8 = vor.u32 %v411_v6, %v385_v5  ;;  %v407_v10 = vld [vmem:[#allocation3 + $0x98] sm:$0xf0]  ;;  %211 = vmatpush.bf16.msra.mxu0 %v378_v3  ;;  %v367_v13 = vld [vmem:[#allocation3 + $0x9c] sm:$0xf0]  ;;  %v373_v14 = vld [vmem:[#allocation3 + $0x98] sm:$0xf] }
   0x9   :  { %v366_v12 = vor.u32 %v407_v10, %v365_v9  ;;  %v408_v15 = vld [vmem:[#allocation3 + $0xa0] sm:$0xf0]  ;;  %225 = vmatpush.bf16.msra.mxu1 %v382_v7  ;;  %v370_v16 = vor.u32 %v406_v11, %v367_v13  ;;  %v353_v18 = vld [vmem:[#allocation3 + $0x78] sm:$0xf]  ;;  %v403_v20 = vld [vmem:[#allocation3 + $0x7c] sm:$0xf] }
   0xa   :  { %239 = vmatpush.bf16.msra.mxu2 %v386_v8  ;;  %v374_v17 = vor.u32 %v408_v15, %v373_v14  ;;  %v404_v19 = vld [vmem:[#allocation3 + $0x80] sm:$0xf0]  ;;  %v355_v21 = vld [vmem:[#allocation3 + $0x84] sm:$0xf0]  ;;  %v361_v22 = vld [vmem:[#allocation3 + $0x80] sm:$0xf] }
   0xb   :  { %v405_v23 = vld [vmem:[#allocation3 + $0x88] sm:$0xf0]  ;;  %v354_v24 = vor.u32 %v404_v19, %v353_v18  ;;  %v358_v25 = vor.u32 %v403_v20, %v355_v21  ;;  %v341_v27 = vld [vmem:[#allocation3 + $0x60] sm:$0xf]  ;;  %v400_v29 = vld [vmem:[#allocation3 + $0x64] sm:$0xf] }
   0xc   :  { %212 = vmatpush.bf16.msra.mxu0 %v366_v12  ;;  %v362_v26 = vor.u32 %v405_v23, %v361_v22  ;;  %v401_v28 = vld [vmem:[#allocation3 + $0x68] sm:$0xf0]  ;;  %v343_v30 = vld [vmem:[#allocation3 + $0x6c] sm:$0xf0]  ;;  %v349_v31 = vld [vmem:[#allocation3 + $0x68] sm:$0xf] }
   0xd   :  { %226 = vmatpush.bf16.msra.mxu1 %v370_v16  ;;  %v402_v32 = vld [vmem:[#allocation3 + $0x70] sm:$0xf0]  ;;  %v342_v33 = vor.u32 %v401_v28, %v341_v27  ;;  %v346_v34 = vor.u32 %v400_v29, %v343_v30  ;;  %v329_v36 = vld [vmem:[#allocation3 + $0x48] sm:$0xf]  ;;  %v397_v38 = vld [vmem:[#allocation3 + $0x4c] sm:$0xf] }
   0xe   :  { %240 = vmatpush.bf16.msra.mxu2 %v374_v17  ;;  %v350_v35 = vor.u32 %v402_v32, %v349_v31  ;;  %v398_v37 = vld [vmem:[#allocation3 + $0x50] sm:$0xf0]  ;;  %v331_v39 = vld [vmem:[#allocation3 + $0x54] sm:$0xf0]  ;;  %v337_v40 = vld [vmem:[#allocation3 + $0x50] sm:$0xf] }
   0xf   :  { %v399_v41 = vld [vmem:[#allocation3 + $0x58] sm:$0xf0]  ;;  %v330_v42 = vor.u32 %v398_v37, %v329_v36  ;;  %v334_v43 = vor.u32 %v397_v38, %v331_v39  ;;  %v317_v45 = vld [vmem:[#allocation3 + $0x30] sm:$0xf]  ;;  %v394_v47 = vld [vmem:[#allocation3 + $0x34] sm:$0xf] }
  0x10   :  { %213 = vmatpush.bf16.msra.mxu0 %v354_v24  ;;  %v338_v44 = vor.u32 %v399_v41, %v337_v40  ;;  %v395_v46 = vld [vmem:[#allocation3 + $0x38] sm:$0xf0]  ;;  %v319_v48 = vld [vmem:[#allocation3 + $0x3c] sm:$0xf0]  ;;  %v325_v49 = vld [vmem:[#allocation3 + $0x38] sm:$0xf] }
  0x11   :  { %227 = vmatpush.bf16.msra.mxu1 %v358_v25  ;;  %v396_v50 = vld [vmem:[#allocation3 + $0x40] sm:$0xf0]  ;;  %v318_v51 = vor.u32 %v395_v46, %v317_v45  ;;  %v322_v52 = vor.u32 %v394_v47, %v319_v48  ;;  %v305_v54 = vld [vmem:[#allocation3 + $0x18] sm:$0xf]  ;;  %v391_v56 = vld [vmem:[#allocation3 + $0x1c] sm:$0xf] }
  0x12   :  { %241 = vmatpush.bf16.msra.mxu2 %v362_v26  ;;  %v326_v53 = vor.u32 %v396_v50, %v325_v49  ;;  %v392_v55 = vld [vmem:[#allocation3 + $0x20] sm:$0xf0]  ;;  %v307_v57 = vld [vmem:[#allocation3 + $0x24] sm:$0xf0]  ;;  %v313_v58 = vld [vmem:[#allocation3 + $0x20] sm:$0xf] }
  0x13   :  { %v393_v59 = vld [vmem:[#allocation3 + $0x28] sm:$0xf0]  ;;  %v306_v60 = vor.u32 %v392_v55, %v305_v54  ;;  %v310_v61 = vor.u32 %v391_v56, %v307_v57  ;;  %v293_v63 = vld [vmem:[#allocation3] sm:$0xf]  ;;  %v388_v1 = vld [vmem:[#allocation3 + $0x4] sm:$0xf] }
  0x14   :  { %214 = vmatpush.bf16.msra.mxu0 %v342_v33  ;;  %v314_v62 = vor.u32 %v393_v59, %v313_v58  ;;  %v389_v0 = vld [vmem:[#allocation3 + $0x8] sm:$0xf0]  ;;  %v295_v2 = vld [vmem:[#allocation3 + $0xc] sm:$0xf0]  ;;  %v301_v3 = vld [vmem:[#allocation3 + $0x8] sm:$0xf] }
  0x15   :  { %228 = vmatpush.bf16.msra.mxu1 %v346_v34  ;;  %v390_v4 = vld [vmem:[#allocation3 + $0x10] sm:$0xf0]  ;;  %v294_v5 = vor.u32 %v389_v0, %v293_v63  ;;  %v298_v6 = vor.u32 %v388_v1, %v295_v2  ;;  %v387_v8 = vld [vmem:[%s477_s0] sm:$0xff] }
  0x16   :  { %242 = vmatpush.bf16.msra.mxu2 %v350_v35  ;;  %v302_v7 = vor.u32 %v390_v4, %v301_v3 }
  0x18   :  { %215 = vmatpush.bf16.msra.mxu0 %v330_v42 }
  0x19   :  { %229 = vmatpush.bf16.msra.mxu1 %v334_v43 }
  0x1a   :  { %243 = vmatpush.bf16.msra.mxu2 %v338_v44 }
  0x1c   :  { %216 = vmatpush.bf16.msra.mxu0 %v318_v51 }
  0x1d   :  { %230 = vmatpush.bf16.msra.mxu1 %v322_v52 }
  0x1e   :  { %244 = vmatpush.bf16.msra.mxu2 %v326_v53 }
  0x20   :  { %217 = vmatpush.bf16.msra.mxu0 %v306_v60 }
  0x21   :  { %231 = vmatpush.bf16.msra.mxu1 %v310_v61 }
  0x22   :  { %245 = vmatpush.bf16.msra.mxu2 %v314_v62 }
  0x24   :  { %218 = vmatpush.bf16.msra.mxu0 %v294_v5 }
  0x25   :  { %232 = vmatpush.bf16.msra.mxu1 %v298_v6 }
  0x26   :  { %246 = vmatpush.bf16.msra.mxu2 %v302_v7 }
  0x27   :  { %219 = vmatmul.bf16.vlgmr.msra.gmra.mxu0 %v387_v8 }
  0x28   :  { %233 = vmatmul.bf16.vlgmr.msra.gmra.mxu1 %v387_v8 }
  0x29   :  { %247 = vmatmul.bf16.vlgmr.msra.gmra.mxu2 %v387_v8 }
  0xa4   :  { %v220_v9 = vpop.f32.mrf.mxu0 }
  0xa5   :  { %v234_v10 = vpop.f32.mrf.mxu1 }
  0xa6   :  { %v274_v11 = vpack.c.bf16 %v234_v10, %v220_v9 }
  0xa8   :  { %278 = vst [vmem:[%s479_s2] sm:$0xff] %v274_v11 }
  0xac   :  { %v248_v12 = vpop.f32.mrf.mxu2  ;;  %v222_v14 = vpop.f32.mrf.mxu0 }
  0xad   :  { %v275_v13 = vpack.c.bf16 %v248_v12, %v248_v12  ;;  %v236_v15 = vpop.f32.mrf.mxu1 }
  0xae   :  { %v276_v16 = vpack.c.bf16 %v236_v15, %v222_v14 }
  0xaf   :  { %279 = vst [vmem:[%s479_s2 + $0x8] sm:$0xf] %v275_v13 }
  0xb0   :  { %280 = vst [vmem:[%s479_s2 + $0xc] sm:$0xff] %v276_v16 }
  0xb4   :  { %v250_v17 = vpop.f32.mrf.mxu2 }
  0xb5   :  { %v277_v18 = vpack.c.bf16 %v250_v17, %v250_v17 }
  0xb7   :  { %281 = vst [vmem:[%s479_s2 + $0x14] sm:$0xf] %v277_v18 }
  0xb8   :  { %286 = vsyncpa [#allocation4], 1 }

// kernel: _lambda_.24
= control target key start
LH: loop header
LB: loop body
LE: loop exit
PB: predicated region body
PF: predicated region fallthrough
CT: control target
= control target key end

     0   :  { %s735_s12 = smov 0   ;;  %s737_s13 = smov 0   ;;  %s809_s0 = inlined_call_operand.vmem [shape: bf16[2,4,8,32], index: 0, kind: input, shape index: {}]   ;;  %s810_s1 = inlined_call_operand.vmem [shape: bf16[2,4,8,32], index: 1, kind: input, shape index: {}]   ;;  %s811_s2 = inlined_call_operand.vmem [shape: bf16[2,4,8,32], index: 2, kind: input, shape index: {}]   ;;  %s812_s3 = inlined_call_operand.vmem [shape: bf16[2,4,8,32], index: 3, kind: output, shape index: {}]  }
   0x1   :  { %s739_s14 = smov 0   ;;  %s741_s15 = smov 0  }
   0x2   :  { %s743_s16 = smov 0  }
   0x3 LB: > { %s35_s17 = sadd.s32 1, %s702_s14  ;;  %s39_s18 = sadd.s32 1, %s706_s15  ;;  %s710_s16 = sphi %s743_s16, %s13_s16   ;;  %s706_s15 = sphi %s741_s15, %s816_s15   ;;  %s702_s14 = sphi %s739_s14, %s815_s14   ;;  %s698_s13 = sphi %s737_s13, %s814_s13   ;;  %s694_s12 = sphi %s735_s12, %s813_s12  }
   0x4   : > { %p37_p0 = scmp.ge.s32.totalorder %s35_s17, 4  ;;  %p607_p1 = scmp.ge.s32.totalorder %s710_s16, 1 }
   0x5   : > { %p217_p2 = scmp.lt.s32.totalorder %s710_s16, 9 }
   0x6   : > { %s818_s17 = smov (%p37_p0, %s35_s17), 0  ;;  %s820_s18 = smov (!%p37_p0, %s39_s18), %s706_s15 }
   0x7   : > { %p218_p3 = pnand %p607_p1, %p217_p2  ;;  %p41_p4 = scmp.ge.s32.totalorder %s820_s18, 2 }
   0x8   : > { %p275_p5 = scmp.lt.s32.totalorder (!%p218_p3), %s698_s13, 1  ;;  %p277_p6 = scmp.lt.s32.totalorder (!%p218_p3), %s694_s12, 3 }
   0x9   : > { %s822_s18 = smov (%p41_p4, %s820_s18), 0  ;;  %221 = sbr.rel (%p218_p3) target bundleno = 664 (0x298), region = 32 }
   0xe   : > { %vm324_vm0 = vcmask 7168   ;;  %v712_v0 = vmov 0.0   ;;  %vm327_vm1 = vcmask 261120   ;;  %s824_s13 = smov (!%p275_p5, %s698_s13), 1  ;;  %s826_s12 = smov (!%p277_p6, %s694_s12), 3  ;;  %v713_v7 = vmov -inf  }
   0xf   : > { %326 = vst.msk [vmem:[#allocation3] sm:$0xff] %vm324_vm0, %v712_v0  ;;  %s608_s19 = sshll.u32 %s824_s13, 2  ;;  %v361_v8 = vlaneseq  ;;  %vm372_vm3 = vcmask 64512   ;;  %v714_v15 = vmov 0   ;;  %vm408_vm4 = vcmask 1043456  }
  0x10   : > { %328 = vst.msk [vmem:[#allocation4] sm:$0xff] %vm327_vm1, %v712_v0  ;;  %s283_s20 = sadd.s32 %s608_s19, %s826_s12  ;;  %663 = vset.pattern.permute.xlu0 %v714_v15  ;;  %665 = vset.pattern.permute.xlu2 %v714_v15  ;;  %vm454_vm9 = vcmask 257024  }
  0x11   : > { %s767_s21 = sshll.u32 %s283_s20, 2  ;;  %325 = vst.msk [vmem:[#allocation2] sm:$0xff] %vm324_vm0, %v713_v7  ;;  %v362_v9 = vshrl.u32 %v361_v8, 7  ;;  %v366_v10 = vand.u32 127, %v361_v8  ;;  %664 = vset.pattern.permute.xlu1 %v714_v15 }
  0x12   : > { %s296_s24 = scalar_lea.vmem %s810_s1, %s767_s21  ;;  %s285_s27 = scalar_lea.vmem %s809_s0, %s767_s21 }
  0x13   : > { %v340_v1 = vld [vmem:[%s296_s24] sm:$0xf]  ;;  %vm369_vm2 = vcmp.le.s32.totalorder %v366_v10, %v362_v9  ;;  %s307_s30 = scalar_lea.vmem %s811_s2, %s767_s21  ;;  %s318_s6 = scalar_lea.vmem %s812_s3, %s767_s21 }
  0x14   : > { %v346_v2 = vsel %vm327_vm1, %v340_v1, 0  ;;  %v336_v3 = vld [vmem:[%s285_s27] sm:$0xf] }
  0x15   : > { %355 = vmatpush.bf16.xpose.msra.mxu0 %v346_v2  ;;  %v337_v4 = vunpack.c.l.bf16 %v336_v3  ;;  %v404_v22 = vld [vmem:[%s307_s30] sm:$0xf] }
  0x16   : > { %v410_v23 = vsel %vm408_vm4, %v404_v22, 0  ;;  %v388_v30 = vld [vmem:[#allocation3] sm:$0xff] }
  0x17   : > { %v338_v5 = vmul.f32 0.17675781, %v337_v4  ;;  %419 = vmatpush.bf16.msra.mxu1 %v410_v23  ;;  %v396_v34 = vld [vmem:[#allocation4] sm:$0xff] }
  0x18   : > { %v371_v16 = vld [vmem:[#allocation2] sm:$0xff] }
  0x19   : > { %v339_v6 = vpack.c.bf16 %v338_v5, %v338_v5 }
  0x1c   : > { %616 = vmatmul.msk.bf16.vlgmr.msra.gmra.mxu0 %vm327_vm1, %v339_v6 }
  0x99   : > { %v357_v11 = vpop.f32.mrf.mxu0 }
  0x9a   : > { %v370_v12 = vsel %vm369_vm2, %v357_v11, -1e+30 }
  0x9b   : > { %v373_v13 = vsel %vm372_vm3, %v370_v12, -inf }
  0x9c   : > { %374 = vmax.xlane.f32.xlu0 %v373_v13 }
  0xa1   : > { %v359_v14 = vpop.f32.mrf.mxu0 }
 0x10f   : > { %v375_v17 = vpop.xlane.xlu0 %374 }
 0x110   : > { %v376_v18 = vmax.f32 %v371_v16, %v375_v17 }
 0x112   : > { %v377_v19 = vsub.f32 %v371_v16, %v376_v18  ;;  %427 = vst.msk [vmem:[#allocation2] sm:$0xff] %vm324_vm0, %v376_v18  ;;  %382 = vperm.xlu0 %663, %v376_v18  }
 0x114   : > { %v378_v20 = vmul.f32 1.442695, %v377_v19 }
 0x116   : > { %666 = vpow2.f32 %v378_v20 }
 0x11c   : > { %v667_v21 = vpop.eup %666 }
 0x11d   : > { %399 = vperm.xlu2 %665, %v667_v21   ;;  %v389_v31 = vmul.f32 %v667_v21, %v388_v30 }
 0x177   : > { %v400_v35 = vpop.permute.xlu2 %399 }
 0x178   : > { %v402_v36 = vmul.f32 %v400_v35, %v396_v34 }
 0x184   : > { %v383_v24 = vpop.permute.xlu0 %382 }
 0x185   : > { %v385_v25 = vsub.f32 %v370_v12, %v383_v24 }
 0x187   : > { %v386_v26 = vmul.f32 1.442695, %v385_v25 }
 0x189   : > { %668 = vpow2.f32 %v386_v26 }
 0x18f   : > { %v669_v27 = vpop.eup %668 }
 0x190   : > { %v390_v28 = vsel %vm372_vm3, %v669_v27, 0.0  ;;  %v403_v29 = vpack.c.bf16 %v669_v27, %v669_v27 }
 0x191   : > { %391 = vadd.xlane.f32.xlu1 %v390_v28 }
 0x192   : > { %617 = vmatmul.msk.bf16.vlgmr.msra.gmra.mxu1 %vm372_vm3, %v403_v29 }
 0x204   : > { %v392_v32 = vpop.xlane.xlu1 %391 }
 0x205   : > { %v393_v33 = vadd.f32 %v392_v32, %v389_v31 }
 0x207   : > { %395 = vst.msk [vmem:[#allocation3] sm:$0xff] %vm324_vm0, %v393_v33 }
 0x20e   : > { %v432_v37 = vld [vmem:[#allocation3] sm:$0xff] }
 0x20f   : > { %v421_v38 = vpop.f32.mrf.mxu1  ;;  %435 = vperm.xlu1 %664, %v432_v37  }
 0x210   : > { %v425_v39 = vadd.f32 %v421_v38, %v402_v36 }
 0x212   : > { %426 = vst.msk [vmem:[#allocation4] sm:$0xff] %vm327_vm1, %v425_v39 }
 0x217   : > { %v423_v40 = vpop.f32.mrf.mxu1 }
 0x219   : > { %v431_v51 = vld [vmem:[#allocation4] sm:$0xff] }
 0x281   : > { %v436_v41 = vpop.permute.xlu1 %435 }
 0x282   : > { %670 = vrcp.f32 %v436_v41  ;;  %v449_v45 = vand.u32 2147483648, %v436_v41  ;;  %v447_v47 = vand.u32 2147483647, %v436_v41  ;;  %vm443_vm6 = vweird.f32 %v436_v41 }
 0x284   : > { %v450_v49 = vor.u32 1.1754944e-38, %v449_v45  ;;  %vm448_vm8 = vcmp.eq.f32.partialorder %v447_v47, 8.507059e+37 }
 0x288   : > { %v671_v42 = vpop.eup %670 }
 0x289   : > { %v439_v43 = vmul.f32 %v671_v42, %v436_v41  ;;  %vm444_vm5 = vweird.f32 %v671_v42 }
 0x28a   : > { %vm445_vm7 = vmor %vm443_vm6, %vm444_vm5 }
 0x28b   : > { %v440_v44 = vsub.f32 1.0, %v439_v43 }
 0x28d   : > { %v441_v46 = vmul.f32 %v671_v42, %v440_v44 }
 0x28f   : > { %v442_v48 = vadd.f32 %v671_v42, %v441_v46 }
 0x291   : > { %v446_v50 = vsel %vm445_vm7, %v671_v42, %v442_v48 }
 0x292   : > { %v451_v52 = vsel %vm448_vm8, %v450_v49, %v446_v50 }
 0x293   : > { %v452_v53 = vmul.f32 %v451_v52, %v431_v51 }
 0x295   : > { %v453_v54 = vpack.c.bf16 %v452_v53, %v452_v53 }
 0x297   : > { %455 = vst.msk [vmem:[%s318_s6] sm:$0xf] %vm454_vm9, %v453_v54 }
 0x298 PF: > { %s13_s16 = sadd.s32 1, %s710_s16   ;;  %s813_s12 = smov %s702_s14 }
 0x299   : > { %p10_p7 = scmp.ge.s32.totalorder %s13_s16, 10   ;;  %s814_s13 = smov %s706_s15 }
 0x29a   : > { %s815_s14 = smov %s818_s17  ;;  %s816_s15 = smov %s822_s18 }
 0x29b   :  { %12 = sbr.rel (!%p10_p7) target bundleno = 3 (0x3), region = 80 }

// kernel: _lambda_.25
= control target key start
LH: loop header
LB: loop body
LE: loop exit
PB: predicated region body
PF: predicated region fallthrough
CT: control target
= control target key end

     0   :  { %s231_s1 = inlined_call_operand.vmem [shape: bf16[128,128], index: 1, kind: input, shape index: {}]   ;;  %s232_s0 = inlined_call_operand.vmem [shape: bf16[16,128], index: 0, kind: input, shape index: {}]   ;;  %s233_s2 = inlined_call_operand.vmem [shape: f32[16,128], index: 2, kind: input, shape index: {}]   ;;  %s234_s3 = inlined_call_operand.vmem [shape: f32[16,128], index: 3, kind: output, shape index: {}]  }
   0x1   :  { %v171_v0 = vld [vmem:[%s231_s1 + $0x38] sm:$0xff]  ;;  %v170_v1 = vld [vmem:[%s231_s1 + $0x30] sm:$0xff]  ;;  %v169_v2 = vld [vmem:[%s231_s1 + $0x28] sm:$0xff] }
   0x2   :  { %94 = vmatpush.bf16.msra.mxu0 %v171_v0  ;;  %v168_v3 = vld [vmem:[%s231_s1 + $0x20] sm:$0xff]  ;;  %v167_v4 = vld [vmem:[%s231_s1 + $0x18] sm:$0xff]  ;;  %v166_v5 = vld [vmem:[%s231_s1 + $0x10] sm:$0xff] }
   0x3   :  { %v165_v6 = vld [vmem:[%s231_s1 + $0x8] sm:$0xff]  ;;  %v164_v7 = vld [vmem:[%s231_s1] sm:$0xff] }
   0x4   :  { %v163_v8 = vld [vmem:[%s232_s0] sm:$0xff]  ;;  %v118_v12 = vld [vmem:[%s233_s2 + $0x8] sm:$0xff] }
   0x5   :  { %v117_v9 = vld [vmem:[%s233_s2] sm:$0xff] }
   0x6   :  { %95 = vmatpush.bf16.msra.mxu0 %v170_v1 }
   0xa   :  { %96 = vmatpush.bf16.msra.mxu0 %v169_v2 }
   0xe   :  { %97 = vmatpush.bf16.msra.mxu0 %v168_v3 }
  0x12   :  { %98 = vmatpush.bf16.msra.mxu0 %v167_v4 }
  0x16   :  { %99 = vmatpush.bf16.msra.mxu0 %v166_v5 }
  0x1a   :  { %100 = vmatpush.bf16.msra.mxu0 %v165_v6 }
  0x1e   :  { %101 = vmatpush.bf16.msra.mxu0 %v164_v7 }
  0x21   :  { %102 = vmatmul.bf16.vlgmr.msra.gmra.mxu0 %v163_v8 }
  0x9e   :  { %v103_v10 = vpop.f32.mrf.mxu0 }
  0x9f   :  { %v119_v11 = vadd.f32 %v117_v9, %v103_v10 }
  0xa1   :  { %121 = vst [vmem:[%s234_s3] sm:$0xff] %v119_v11 }
  0xa6   :  { %v105_v13 = vpop.f32.mrf.mxu0 }
  0xa7   :  { %v120_v14 = vadd.f32 %v118_v12, %v105_v13 }
  0xa9   :  { %122 = vst [vmem:[%s234_s3 + $0x8] sm:$0xff] %v120_v14 }

// kernel: _lambda_.27
= control target key start
LH: loop header
LB: loop body
LE: loop exit
PB: predicated region body
PF: predicated region fallthrough
CT: control target
= control target key end

     0   :  { %s1701_s1 = inlined_call_operand.vmem [shape: bf16[128,512], index: 1, kind: input, shape index: {}]   ;;  %s1702_s2 = inlined_call_operand.vmem [shape: bf16[128,512], index: 2, kind: input, shape index: {}]   ;;  %s1703_s0 = inlined_call_operand.vmem [shape: bf16[16,128], index: 0, kind: input, shape index: {}]   ;;  %s1704_s3 = inlined_call_operand.vmem [shape: bf16[16,512], index: 3, kind: output, shape index: {}]  }
   0x1   :  { %v903_v0 = vld [vmem:[%s1701_s1 + $0xe0] sm:$0xf]  ;;  %v1084_v1 = vld [vmem:[%s1701_s1 + $0xec] sm:$0xf0]  ;;  %v1082_v2 = vld [vmem:[%s1701_s1 + $0xe4] sm:$0xf] }
   0x2   :  { %v904_v3 = vor.u32 %v1084_v1, %v903_v0  ;;  %v905_v4 = vld [vmem:[%s1701_s1 + $0xf0] sm:$0xf0]  ;;  %v911_v5 = vld [vmem:[%s1701_s1 + $0xe8] sm:$0xf]  ;;  %v1085_v6 = vld [vmem:[%s1701_s1 + $0xf4] sm:$0xf0] }
   0x3   :  { %v908_v7 = vor.u32 %v1082_v2, %v905_v4  ;;  %v912_v8 = vor.u32 %v1085_v6, %v911_v5  ;;  %v1083_v9 = vld [vmem:[%s1701_s1 + $0xec] sm:$0xf]  ;;  %v913_v10 = vld [vmem:[%s1701_s1 + $0xf8] sm:$0xf0]  ;;  %v887_v11 = vld [vmem:[%s1701_s1 + $0xc0] sm:$0xf] }
   0x4   :  { %242 = vmatpush.bf16.msra.mxu0 %v904_v3  ;;  %v916_v12 = vor.u32 %v1083_v9, %v913_v10  ;;  %v1080_v13 = vld [vmem:[%s1701_s1 + $0xcc] sm:$0xf0]  ;;  %v1078_v14 = vld [vmem:[%s1701_s1 + $0xc4] sm:$0xf]  ;;  %v889_v15 = vld [vmem:[%s1701_s1 + $0xd0] sm:$0xf0] }
   0x5   :  { %256 = vmatpush.bf16.msra.mxu1 %v908_v7  ;;  %270 = vmatpush.bf16.msra.mxu2 %v912_v8  ;;  %v888_v16 = vor.u32 %v1080_v13, %v887_v11  ;;  %v892_v17 = vor.u32 %v1078_v14, %v889_v15  ;;  %v895_v18 = vld [vmem:[%s1701_s1 + $0xc8] sm:$0xf]  ;;  %v1081_v19 = vld [vmem:[%s1701_s1 + $0xd4] sm:$0xf0]  ;;  %v1079_v20 = vld [vmem:[%s1701_s1 + $0xcc] sm:$0xf] }
   0x6   :  { %284 = vmatpush.bf16.msra.mxu3 %v916_v12  ;;  %v896_v21 = vor.u32 %v1081_v19, %v895_v18  ;;  %v897_v22 = vld [vmem:[%s1701_s1 + $0xd8] sm:$0xf0]  ;;  %v871_v23 = vld [vmem:[%s1701_s1 + $0xa0] sm:$0xf]  ;;  %v1076_v24 = vld [vmem:[%s1701_s1 + $0xac] sm:$0xf0] }
   0x7   :  { %v900_v25 = vor.u32 %v1079_v20, %v897_v22  ;;  %v1074_v26 = vld [vmem:[%s1701_s1 + $0xa4] sm:$0xf]  ;;  %v873_v27 = vld [vmem:[%s1701_s1 + $0xb0] sm:$0xf0]  ;;  %v879_v28 = vld [vmem:[%s1701_s1 + $0xa8] sm:$0xf]  ;;  %v872_v29 = vor.u32 %v1076_v24, %v871_v23 }
   0x8   :  { %243 = vmatpush.bf16.msra.mxu0 %v888_v16  ;;  %v1077_v30 = vld [vmem:[%s1701_s1 + $0xb4] sm:$0xf0]  ;;  %v1075_v31 = vld [vmem:[%s1701_s1 + $0xac] sm:$0xf]  ;;  %v881_v32 = vld [vmem:[%s1701_s1 + $0xb8] sm:$0xf0]  ;;  %v876_v33 = vor.u32 %v1074_v26, %v873_v27 }
   0x9   :  { %257 = vmatpush.bf16.msra.mxu1 %v892_v17  ;;  %271 = vmatpush.bf16.msra.mxu2 %v896_v21  ;;  %v880_v34 = vor.u32 %v1077_v30, %v879_v28  ;;  %v855_v35 = vld [vmem:[%s1701_s1 + $0x80] sm:$0xf]  ;;  %v1072_v36 = vld [vmem:[%s1701_s1 + $0x8c] sm:$0xf0]  ;;  %v1070_v37 = vld [vmem:[%s1701_s1 + $0x84] sm:$0xf]  ;;  %v884_v38 = vor.u32 %v1075_v31, %v881_v32 }
   0xa   :  { %285 = vmatpush.bf16.msra.mxu3 %v900_v25  ;;  %v857_v39 = vld [vmem:[%s1701_s1 + $0x90] sm:$0xf0]  ;;  %v863_v40 = vld [vmem:[%s1701_s1 + $0x88] sm:$0xf]  ;;  %v1073_v41 = vld [vmem:[%s1701_s1 + $0x94] sm:$0xf0]  ;;  %v856_v44 = vor.u32 %v1072_v36, %v855_v35 }
   0xb   :  { %v1071_v42 = vld [vmem:[%s1701_s1 + $0x8c] sm:$0xf]  ;;  %v865_v43 = vld [vmem:[%s1701_s1 + $0x98] sm:$0xf0]  ;;  %v860_v45 = vor.u32 %v1070_v37, %v857_v39  ;;  %v864_v46 = vor.u32 %v1073_v41, %v863_v40  ;;  %v839_v47 = vld [vmem:[%s1701_s1 + $0x60] sm:$0xf] }
   0xc   :  { %244 = vmatpush.bf16.msra.mxu0 %v872_v29  ;;  %v1068_v48 = vld [vmem:[%s1701_s1 + $0x6c] sm:$0xf0]  ;;  %v1066_v49 = vld [vmem:[%s1701_s1 + $0x64] sm:$0xf]  ;;  %v868_v50 = vor.u32 %v1071_v42, %v865_v43  ;;  %v841_v51 = vld [vmem:[%s1701_s1 + $0x70] sm:$0xf0] }
   0xd   :  { %258 = vmatpush.bf16.msra.mxu1 %v876_v33  ;;  %272 = vmatpush.bf16.msra.mxu2 %v880_v34  ;;  %v847_v52 = vld [vmem:[%s1701_s1 + $0x68] sm:$0xf]  ;;  %v1069_v53 = vld [vmem:[%s1701_s1 + $0x74] sm:$0xf0]  ;;  %v1067_v54 = vld [vmem:[%s1701_s1 + $0x6c] sm:$0xf]  ;;  %v840_v56 = vor.u32 %v1068_v48, %v839_v47  ;;  %v844_v57 = vor.u32 %v1066_v49, %v841_v51 }
   0xe   :  { %286 = vmatpush.bf16.msra.mxu3 %v884_v38  ;;  %v849_v55 = vld [vmem:[%s1701_s1 + $0x78] sm:$0xf0]  ;;  %v848_v58 = vor.u32 %v1069_v53, %v847_v52  ;;  %v823_v59 = vld [vmem:[%s1701_s1 + $0x40] sm:$0xf]  ;;  %v1064_v60 = vld [vmem:[%s1701_s1 + $0x4c] sm:$0xf0] }
   0xf   :  { %v1062_v61 = vld [vmem:[%s1701_s1 + $0x44] sm:$0xf]  ;;  %v852_v62 = vor.u32 %v1067_v54, %v849_v55  ;;  %v825_v63 = vld [vmem:[%s1701_s1 + $0x50] sm:$0xf0]  ;;  %v831_v0 = vld [vmem:[%s1701_s1 + $0x48] sm:$0xf]  ;;  %v824_v4 = vor.u32 %v1064_v60, %v823_v59 }
  0x10   :  { %245 = vmatpush.bf16.msra.mxu0 %v856_v44  ;;  %v1065_v1 = vld [vmem:[%s1701_s1 + $0x54] sm:$0xf0]  ;;  %v1063_v2 = vld [vmem:[%s1701_s1 + $0x4c] sm:$0xf]  ;;  %v833_v3 = vld [vmem:[%s1701_s1 + $0x58] sm:$0xf0]  ;;  %v828_v5 = vor.u32 %v1062_v61, %v825_v63 }
  0x11   :  { %259 = vmatpush.bf16.msra.mxu1 %v860_v45  ;;  %273 = vmatpush.bf16.msra.mxu2 %v864_v46  ;;  %v832_v6 = vor.u32 %v1065_v1, %v831_v0  ;;  %v807_v7 = vld [vmem:[%s1701_s1 + $0x20] sm:$0xf]  ;;  %v1060_v8 = vld [vmem:[%s1701_s1 + $0x2c] sm:$0xf0]  ;;  %v1058_v9 = vld [vmem:[%s1701_s1 + $0x24] sm:$0xf]  ;;  %v836_v10 = vor.u32 %v1063_v2, %v833_v3 }
  0x12   :  { %287 = vmatpush.bf16.msra.mxu3 %v868_v50  ;;  %v809_v11 = vld [vmem:[%s1701_s1 + $0x30] sm:$0xf0]  ;;  %v815_v12 = vld [vmem:[%s1701_s1 + $0x28] sm:$0xf]  ;;  %v1061_v13 = vld [vmem:[%s1701_s1 + $0x34] sm:$0xf0]  ;;  %v808_v16 = vor.u32 %v1060_v8, %v807_v7 }
  0x13   :  { %v1059_v14 = vld [vmem:[%s1701_s1 + $0x2c] sm:$0xf]  ;;  %v817_v15 = vld [vmem:[%s1701_s1 + $0x38] sm:$0xf0]  ;;  %v791_v17 = vld [vmem:[%s1701_s1] sm:$0xf]  ;;  %v812_v19 = vor.u32 %v1058_v9, %v809_v11  ;;  %v816_v20 = vor.u32 %v1061_v13, %v815_v12 }
  0x14   :  { %246 = vmatpush.bf16.msra.mxu0 %v840_v56  ;;  %v1056_v18 = vld [vmem:[%s1701_s1 + $0xc] sm:$0xf0]  ;;  %v1054_v21 = vld [vmem:[%s1701_s1 + $0x4] sm:$0xf]  ;;  %v793_v22 = vld [vmem:[%s1701_s1 + $0x10] sm:$0xf0]  ;;  %v820_v24 = vor.u32 %v1059_v14, %v817_v15 }
  0x15   :  { %260 = vmatpush.bf16.msra.mxu1 %v844_v57  ;;  %274 = vmatpush.bf16.msra.mxu2 %v848_v58  ;;  %v799_v23 = vld [vmem:[%s1701_s1 + $0x8] sm:$0xf]  ;;  %v1057_v25 = vld [vmem:[%s1701_s1 + $0x14] sm:$0xf0]  ;;  %v1055_v26 = vld [vmem:[%s1701_s1 + $0xc] sm:$0xf]  ;;  %v792_v31 = vor.u32 %v1056_v18, %v791_v17  ;;  %v796_v35 = vor.u32 %v1054_v21, %v793_v22 }
  0x16   :  { %288 = vmatpush.bf16.msra.mxu3 %v852_v62  ;;  %v801_v27 = vld [vmem:[%s1701_s1 + $0x18] sm:$0xf0]  ;;  %v1031_v28 = vld [vmem:[%s1702_s2 + $0xe0] sm:$0xf]  ;;  %v1116_v29 = vld [vmem:[%s1702_s2 + $0xec] sm:$0xf0]  ;;  %v800_v36 = vor.u32 %v1057_v25, %v799_v23 }
  0x17   :  { %v1114_v30 = vld [vmem:[%s1702_s2 + $0xe4] sm:$0xf]  ;;  %v1033_v32 = vld [vmem:[%s1702_s2 + $0xf0] sm:$0xf0]  ;;  %v1039_v33 = vld [vmem:[%s1702_s2 + $0xe8] sm:$0xf]  ;;  %v804_v39 = vor.u32 %v1055_v26, %v801_v27  ;;  %v1032_v40 = vor.u32 %v1116_v29, %v1031_v28 }
  0x18   :  { %247 = vmatpush.bf16.msra.mxu0 %v824_v4  ;;  %v1117_v34 = vld [vmem:[%s1702_s2 + $0xf4] sm:$0xf0]  ;;  %v1115_v37 = vld [vmem:[%s1702_s2 + $0xec] sm:$0xf]  ;;  %v1041_v38 = vld [vmem:[%s1702_s2 + $0xf8] sm:$0xf0]  ;;  %v1036_v42 = vor.u32 %v1114_v30, %v1033_v32 }
  0x19   :  { %261 = vmatpush.bf16.msra.mxu1 %v828_v5  ;;  %275 = vmatpush.bf16.msra.mxu2 %v832_v6  ;;  %v1389_v41 = vld [vmem:[%s1703_s0] sm:$0xff]  ;;  %v1040_v43 = vor.u32 %v1117_v34, %v1039_v33  ;;  %v1112_v45 = vld [vmem:[%s1702_s2 + $0xcc] sm:$0xf0]  ;;  %v1044_v47 = vor.u32 %v1115_v37, %v1041_v38  ;;  %v1017_v48 = vld [vmem:[%s1702_s2 + $0xd0] sm:$0xf0] }
  0x1a   :  { %289 = vmatpush.bf16.msra.mxu3 %v836_v10  ;;  %v1015_v44 = vld [vmem:[%s1702_s2 + $0xc0] sm:$0xf]  ;;  %v1110_v46 = vld [vmem:[%s1702_s2 + $0xc4] sm:$0xf]  ;;  %v1023_v49 = vld [vmem:[%s1702_s2 + $0xc8] sm:$0xf] }
  0x1b   :  { %v1113_v50 = vld [vmem:[%s1702_s2 + $0xd4] sm:$0xf0]  ;;  %v1111_v51 = vld [vmem:[%s1702_s2 + $0xcc] sm:$0xf]  ;;  %v1025_v52 = vld [vmem:[%s1702_s2 + $0xd8] sm:$0xf0]  ;;  %v1016_v53 = vor.u32 %v1112_v45, %v1015_v44  ;;  %v1020_v54 = vor.u32 %v1110_v46, %v1017_v48 }
  0x1c   :  { %248 = vmatpush.bf16.msra.mxu0 %v808_v16  ;;  %v1024_v55 = vor.u32 %v1113_v50, %v1023_v49  ;;  %v999_v56 = vld [vmem:[%s1702_s2 + $0xa0] sm:$0xf]  ;;  %v1108_v57 = vld [vmem:[%s1702_s2 + $0xac] sm:$0xf0]  ;;  %v1106_v58 = vld [vmem:[%s1702_s2 + $0xa4] sm:$0xf]  ;;  %v1028_v59 = vor.u32 %v1111_v51, %v1025_v52 }
  0x1d   :  { %262 = vmatpush.bf16.msra.mxu1 %v812_v19  ;;  %276 = vmatpush.bf16.msra.mxu2 %v816_v20  ;;  %v1001_v60 = vld [vmem:[%s1702_s2 + $0xb0] sm:$0xf0]  ;;  %v1007_v61 = vld [vmem:[%s1702_s2 + $0xa8] sm:$0xf]  ;;  %v1109_v62 = vld [vmem:[%s1702_s2 + $0xb4] sm:$0xf0]  ;;  %v1000_v1 = vor.u32 %v1108_v57, %v999_v56 }
  0x1e   :  { %290 = vmatpush.bf16.msra.mxu3 %v820_v24  ;;  %v1107_v63 = vld [vmem:[%s1702_s2 + $0xac] sm:$0xf]  ;;  %v1009_v0 = vld [vmem:[%s1702_s2 + $0xb8] sm:$0xf0]  ;;  %v1004_v2 = vor.u32 %v1106_v58, %v1001_v60  ;;  %v1008_v3 = vor.u32 %v1109_v62, %v1007_v61  ;;  %v983_v4 = vld [vmem:[%s1702_s2 + $0x80] sm:$0xf] }
  0x1f   :  { %v1104_v5 = vld [vmem:[%s1702_s2 + $0x8c] sm:$0xf0]  ;;  %v1102_v6 = vld [vmem:[%s1702_s2 + $0x84] sm:$0xf]  ;;  %v1012_v7 = vor.u32 %v1107_v63, %v1009_v0  ;;  %v985_v8 = vld [vmem:[%s1702_s2 + $0x90] sm:$0xf0] }
  0x20   :  { %249 = vmatpush.bf16.msra.mxu0 %v792_v31  ;;  %v991_v9 = vld [vmem:[%s1702_s2 + $0x88] sm:$0xf]  ;;  %v1105_v10 = vld [vmem:[%s1702_s2 + $0x94] sm:$0xf0]  ;;  %v1103_v11 = vld [vmem:[%s1702_s2 + $0x8c] sm:$0xf]  ;;  %v984_v13 = vor.u32 %v1104_v5, %v983_v4  ;;  %v988_v14 = vor.u32 %v1102_v6, %v985_v8 }
  0x21   :  { %263 = vmatpush.bf16.msra.mxu1 %v796_v35  ;;  %277 = vmatpush.bf16.msra.mxu2 %v800_v36  ;;  %v993_v12 = vld [vmem:[%s1702_s2 + $0x98] sm:$0xf0]  ;;  %v992_v15 = vor.u32 %v1105_v10, %v991_v9  ;;  %v967_v16 = vld [vmem:[%s1702_s2 + $0x60] sm:$0xf]  ;;  %v1100_v17 = vld [vmem:[%s1702_s2 + $0x6c] sm:$0xf0] }
  0x22   :  { %291 = vmatpush.bf16.msra.mxu3 %v804_v39  ;;  %v1098_v18 = vld [vmem:[%s1702_s2 + $0x64] sm:$0xf]  ;;  %v996_v19 = vor.u32 %v1103_v11, %v993_v12  ;;  %v969_v20 = vld [vmem:[%s1702_s2 + $0x70] sm:$0xf0]  ;;  %v975_v21 = vld [vmem:[%s1702_s2 + $0x68] sm:$0xf]  ;;  %v968_v25 = vor.u32 %v1100_v17, %v967_v16 }
  0x23   :  { %250 = vmatmul.bf16.vlgmr.msra.gmra.mxu0 %v1389_v41  ;;  %v1101_v22 = vld [vmem:[%s1702_s2 + $0x74] sm:$0xf0]  ;;  %v1099_v23 = vld [vmem:[%s1702_s2 + $0x6c] sm:$0xf]  ;;  %v977_v24 = vld [vmem:[%s1702_s2 + $0x78] sm:$0xf0]  ;;  %v972_v26 = vor.u32 %v1098_v18, %v969_v20 }
  0x24   :  { %514 = vmatpush.bf16.msrb.mxu0 %v1032_v40  ;;  %264 = vmatmul.bf16.vlgmr.msra.gmra.mxu1 %v1389_v41  ;;  %v976_v27 = vor.u32 %v1101_v22, %v975_v21  ;;  %v951_v28 = vld [vmem:[%s1702_s2 + $0x40] sm:$0xf]  ;;  %v1096_v29 = vld [vmem:[%s1702_s2 + $0x4c] sm:$0xf0]  ;;  %v1094_v30 = vld [vmem:[%s1702_s2 + $0x44] sm:$0xf]  ;;  %v980_v31 = vor.u32 %v1099_v23, %v977_v24 }
  0x25   :  { %528 = vmatpush.bf16.msrb.mxu1 %v1036_v42  ;;  %542 = vmatpush.bf16.msrb.mxu2 %v1040_v43  ;;  %v953_v32 = vld [vmem:[%s1702_s2 + $0x50] sm:$0xf0]  ;;  %v959_v33 = vld [vmem:[%s1702_s2 + $0x48] sm:$0xf]  ;;  %v1097_v34 = vld [vmem:[%s1702_s2 + $0x54] sm:$0xf0]  ;;  %v952_v37 = vor.u32 %v1096_v29, %v951_v28 }
  0x26   :  { %556 = vmatpush.bf16.msrb.mxu3 %v1044_v47  ;;  %278 = vmatmul.bf16.vlgmr.msra.gmra.mxu2 %v1389_v41  ;;  %v1095_v35 = vld [vmem:[%s1702_s2 + $0x4c] sm:$0xf]  ;;  %v961_v36 = vld [vmem:[%s1702_s2 + $0x58] sm:$0xf0]  ;;  %v956_v38 = vor.u32 %v1094_v30, %v953_v32  ;;  %v960_v39 = vor.u32 %v1097_v34, %v959_v33  ;;  %v935_v40 = vld [vmem:[%s1702_s2 + $0x20] sm:$0xf] }
  0x27   :  { %292 = vmatmul.bf16.vlgmr.msra.gmra.mxu3 %v1389_v41  ;;  %v1092_v42 = vld [vmem:[%s1702_s2 + $0x2c] sm:$0xf0]  ;;  %v1090_v43 = vld [vmem:[%s1702_s2 + $0x24] sm:$0xf]  ;;  %v964_v44 = vor.u32 %v1095_v35, %v961_v36  ;;  %v937_v45 = vld [vmem:[%s1702_s2 + $0x30] sm:$0xf0] }
  0x28   :  { %515 = vmatpush.bf16.msrb.mxu0 %v1016_v53  ;;  %v943_v46 = vld [vmem:[%s1702_s2 + $0x28] sm:$0xf]  ;;  %v1093_v47 = vld [vmem:[%s1702_s2 + $0x34] sm:$0xf0]  ;;  %v1091_v48 = vld [vmem:[%s1702_s2 + $0x2c] sm:$0xf]  ;;  %v936_v50 = vor.u32 %v1092_v42, %v935_v40  ;;  %v940_v51 = vor.u32 %v1090_v43, %v937_v45 }
  0x29   :  { %529 = vmatpush.bf16.msrb.mxu1 %v1020_v54  ;;  %543 = vmatpush.bf16.msrb.mxu2 %v1024_v55  ;;  %v945_v49 = vld [vmem:[%s1702_s2 + $0x38] sm:$0xf0]  ;;  %v944_v52 = vor.u32 %v1093_v47, %v943_v46  ;;  %v919_v53 = vld [vmem:[%s1702_s2] sm:$0xf]  ;;  %v1088_v54 = vld [vmem:[%s1702_s2 + $0xc] sm:$0xf0] }
  0x2a   :  { %557 = vmatpush.bf16.msrb.mxu3 %v1028_v59  ;;  %v1086_v55 = vld [vmem:[%s1702_s2 + $0x4] sm:$0xf]  ;;  %v948_v56 = vor.u32 %v1091_v48, %v945_v49  ;;  %v921_v57 = vld [vmem:[%s1702_s2 + $0x10] sm:$0xf0]  ;;  %v927_v58 = vld [vmem:[%s1702_s2 + $0x8] sm:$0xf]  ;;  %v920_v62 = vor.u32 %v1088_v54, %v919_v53 }
  0x2b   :  { %v1089_v59 = vld [vmem:[%s1702_s2 + $0x14] sm:$0xf0]  ;;  %v1087_v60 = vld [vmem:[%s1702_s2 + $0xc] sm:$0xf]  ;;  %v929_v61 = vld [vmem:[%s1702_s2 + $0x18] sm:$0xf0]  ;;  %v924_v63 = vor.u32 %v1086_v55, %v921_v57 }
  0x2c   :  { %516 = vmatpush.bf16.msrb.mxu0 %v1000_v1  ;;  %v928_v0 = vor.u32 %v1089_v59, %v927_v58  ;;  %v932_v1 = vor.u32 %v1087_v60, %v929_v61 }
  0x2d   :  { %530 = vmatpush.bf16.msrb.mxu1 %v1004_v2  ;;  %544 = vmatpush.bf16.msrb.mxu2 %v1008_v3 }
  0x2e   :  { %558 = vmatpush.bf16.msrb.mxu3 %v1012_v7 }
  0x30   :  { %517 = vmatpush.bf16.msrb.mxu0 %v984_v13 }
  0x31   :  { %531 = vmatpush.bf16.msrb.mxu1 %v988_v14  ;;  %545 = vmatpush.bf16.msrb.mxu2 %v992_v15 }
  0x32   :  { %559 = vmatpush.bf16.msrb.mxu3 %v996_v19 }
  0x34   :  { %518 = vmatpush.bf16.msrb.mxu0 %v968_v25 }
  0x35   :  { %532 = vmatpush.bf16.msrb.mxu1 %v972_v26  ;;  %546 = vmatpush.bf16.msrb.mxu2 %v976_v27 }
  0x36   :  { %560 = vmatpush.bf16.msrb.mxu3 %v980_v31 }
  0x38   :  { %519 = vmatpush.bf16.msrb.mxu0 %v952_v37 }
  0x39   :  { %533 = vmatpush.bf16.msrb.mxu1 %v956_v38  ;;  %547 = vmatpush.bf16.msrb.mxu2 %v960_v39 }
  0x3a   :  { %561 = vmatpush.bf16.msrb.mxu3 %v964_v44 }
  0x3c   :  { %520 = vmatpush.bf16.msrb.mxu0 %v936_v50 }
  0x3d   :  { %534 = vmatpush.bf16.msrb.mxu1 %v940_v51  ;;  %548 = vmatpush.bf16.msrb.mxu2 %v944_v52 }
  0x3e   :  { %562 = vmatpush.bf16.msrb.mxu3 %v948_v56 }
  0x40   :  { %521 = vmatpush.bf16.msrb.mxu0 %v920_v62 }
  0x41   :  { %535 = vmatpush.bf16.msrb.mxu1 %v924_v63  ;;  %549 = vmatpush.bf16.msrb.mxu2 %v928_v0 }
  0x42   :  { %563 = vmatpush.bf16.msrb.mxu3 %v932_v1 }
  0x43   :  { %522 = vmatmul.bf16.vlgmr.msrb.gmra.mxu0 %v1389_v41 }
  0x44   :  { %536 = vmatmul.bf16.vlgmr.msrb.gmra.mxu1 %v1389_v41  ;;  %550 = vmatmul.bf16.vlgmr.msrb.gmra.mxu2 %v1389_v41 }
  0x45   :  { %564 = vmatmul.bf16.vlgmr.msrb.gmra.mxu3 %v1389_v41 }
  0xa0   :  { %v1567_v2 = vpop.f32.mrf.mxu0 }
  0xa1   :  { %v1045_v3 = vmul.f32 -1.442695, %v1567_v2  ;;  %v1570_v4 = vpop.f32.mrf.mxu1 }
  0xa2   :  { %v1046_v5 = vmul.f32 -1.442695, %v1570_v4 }
  0xa3   :  { %1118 = vpow2.f32 %v1045_v3 }
  0xa4   :  { %1120 = vpow2.f32 %v1046_v5 }
  0xa8   :  { %v1578_v9 = vpop.f32.mrf.mxu0 }
  0xa9   :  { %v1573_v6 = vpop.f32.mrf.mxu2  ;;  %v1119_v10 = vpop.eup %1118  ;;  %v1049_v14 = vmul.f32 -1.442695, %v1578_v9 }
  0xaa   :  { %v1047_v7 = vmul.f32 -1.442695, %v1573_v6  ;;  %v1576_v8 = vpop.f32.mrf.mxu3  ;;  %v1581_v11 = vpop.f32.mrf.mxu1  ;;  %v629_v13 = vadd.f32 1.0, %v1119_v10 }
  0xab   :  { %v1048_v41 = vmul.f32 -1.442695, %v1576_v8  ;;  %v1121_v12 = vpop.eup %1120  ;;  %v1050_v16 = vmul.f32 -1.442695, %v1581_v11 }
  0xac   :  { %1122 = vpow2.f32 %v1047_v7  ;;  %v630_v15 = vadd.f32 1.0, %v1121_v12  ;;  %v646_v23 = vand.u32 2147483647, %v629_v13  ;;  %vm642_vm0 = vweird.f32 %v629_v13 }
  0xad   :  { %1124 = vpow2.f32 %v1048_v41  ;;  %v648_v29 = vand.u32 2147483648, %v629_v13 }
  0xae   :  { %1126 = vrcp.f32 %v629_v13  ;;  %vm657_vm1 = vweird.f32 %v630_v15  ;;  %v661_v34 = vand.u32 2147483647, %v630_v15  ;;  %v663_v35 = vand.u32 2147483648, %v630_v15 }
  0xaf   :  { %1128 = vrcp.f32 %v630_v15  ;;  %vm1597_vm3 = vcmp.eq.f32.partialorder %v646_v23, 8.507059e+37  ;;  %v649_v50 = vor.u32 1.1754944e-38, %v648_v29 }
  0xb0   :  { %1130 = vpow2.f32 %v1049_v14  ;;  %vm1616_vm6 = vcmp.eq.f32.partialorder %v661_v34, 8.507059e+37  ;;  %v664_v57 = vor.u32 1.1754944e-38, %v663_v35 }
  0xb1   :  { %1132 = vpow2.f32 %v1050_v16  ;;  %v1585_v17 = vpop.f32.mrf.mxu2 }
  0xb2   :  { %v1123_v18 = vpop.eup %1122  ;;  %v1589_v21 = vpop.f32.mrf.mxu3  ;;  %v1051_v25 = vmul.f32 -1.442695, %v1585_v17 }
  0xb3   :  { %v1125_v19 = vpop.eup %1124  ;;  %v1587_v20 = vadd.f32 1.0, %v1123_v18  ;;  %v1052_v31 = vmul.f32 -1.442695, %v1589_v21 }
  0xb4   :  { %v1127_v22 = vpop.eup %1126  ;;  %v1591_v24 = vadd.f32 1.0, %v1125_v19 }
  0xb5   :  { %v1129_v26 = vpop.eup %1128  ;;  %v638_v27 = vmul.f32 %v1127_v22, %v629_v13  ;;  %1134 = vrcp.f32 %v1587_v20  ;;  %vm643_vm2 = vweird.f32 %v1127_v22  ;;  %v676_v43 = vand.u32 2147483647, %v1587_v20 }
  0xb6   :  { %v1131_v28 = vpop.eup %1130  ;;  %v653_v30 = vmul.f32 %v1129_v26, %v630_v15  ;;  %1136 = vrcp.f32 %v1591_v24  ;;  %vm658_vm4 = vweird.f32 %v1129_v26  ;;  %v678_v44 = vand.u32 2147483648, %v1587_v20  ;;  %vm1612_vm5 = vmor %vm642_vm0, %vm643_vm2 }
  0xb7   :  { %v1133_v32 = vpop.eup %1132  ;;  %v639_v33 = vsub.f32 1.0, %v638_v27  ;;  %1138 = vpow2.f32 %v1051_v25  ;;  %v1601_v39 = vadd.f32 1.0, %v1131_v28  ;;  %v691_v47 = vand.u32 2147483647, %v1591_v24  ;;  %vm1625_vm7 = vmor %vm657_vm1, %vm658_vm4 }
  0xb8   :  { %v654_v37 = vsub.f32 1.0, %v653_v30  ;;  %v1603_v40 = vadd.f32 1.0, %v1133_v32  ;;  %1140 = vpow2.f32 %v1052_v31  ;;  %v693_v48 = vand.u32 2147483648, %v1591_v24 }
  0xb9   :  { %v640_v38 = vmul.f32 %v1127_v22, %v639_v33  ;;  %1142 = vrcp.f32 %v1601_v39  ;;  %vm672_vm8 = vweird.f32 %v1587_v20  ;;  %vm687_vm9 = vweird.f32 %v1591_v24 }
  0xba   :  { %v655_v42 = vmul.f32 %v1129_v26, %v654_v37  ;;  %1144 = vrcp.f32 %v1603_v40  ;;  %vm1635_vm10 = vcmp.eq.f32.partialorder %v676_v43, 8.507059e+37  ;;  %v679_v63 = vor.u32 1.1754944e-38, %v678_v44 }
  0xbb   :  { %v1135_v45 = vpop.eup %1134  ;;  %v641_v46 = vadd.f32 %v1127_v22, %v640_v38  ;;  %vm1639_vm11 = vcmp.eq.f32.partialorder %v691_v47, 8.507059e+37  ;;  %v694_v1 = vor.u32 1.1754944e-38, %v693_v48  ;;  %vm702_vm13 = vweird.f32 %v1601_v39 }
  0xbc   :  { %v656_v51 = vadd.f32 %v1129_v26, %v655_v42  ;;  %v668_v53 = vmul.f32 %v1135_v45, %v1587_v20  ;;  %v1137_v54 = vpop.eup %1136  ;;  %vm673_vm12 = vweird.f32 %v1135_v45  ;;  %v706_v13 = vand.u32 2147483647, %v1601_v39 }
  0xbd   :  { %v645_v55 = vsel %vm1612_vm5, %v1127_v22, %v641_v46  ;;  %v1139_v58 = vpop.eup %1138  ;;  %v683_v61 = vmul.f32 %v1137_v54, %v1591_v24  ;;  %vm688_vm14 = vweird.f32 %v1137_v54  ;;  %vm674_vm15 = vmor %vm672_vm8, %vm673_vm12  ;;  %v708_v25 = vand.u32 2147483648, %v1601_v39 }
  0xbe   :  { %v660_v59 = vsel %vm1625_vm7, %v1129_v26, %v656_v51  ;;  %v669_v60 = vsub.f32 1.0, %v668_v53  ;;  %v1141_v3 = vpop.eup %1140  ;;  %v650_v5 = vsel %vm1597_vm3, %v649_v50, %v645_v55  ;;  %v1649_v14 = vadd.f32 1.0, %v1139_v58  ;;  %vm689_vm0 = vmor %vm687_vm9, %vm688_vm14 }
  0xbf   :  { %v684_v10 = vsub.f32 1.0, %v683_v61  ;;  %v1143_v41 = vpop.eup %1142  ;;  %v665_v12 = vsel %vm1616_vm6, %v664_v57, %v660_v59  ;;  %v757_v23 = vmul.f32 %v650_v5, %v1567_v2  ;;  %v1657_v26 = vadd.f32 1.0, %v1141_v3 }
  0xc0   :  { %v670_v7 = vmul.f32 %v1135_v45, %v669_v60  ;;  %v698_v18 = vmul.f32 %v1143_v41, %v1601_v39  ;;  %v523_v19 = vpop.f32.mrf.mxu0  ;;  %v1145_v22 = vpop.eup %1144  ;;  %1146 = vrcp.f32 %v1649_v14  ;;  %v758_v32 = vmul.f32 %v665_v12, %v1570_v4 }
  0xc1   :  { %v685_v16 = vmul.f32 %v1137_v54, %v684_v10  ;;  %v537_v27 = vpop.f32.mrf.mxu1  ;;  %v713_v31 = vmul.f32 %v1145_v22, %v1603_v40  ;;  %v721_v20 = vand.u32 2147483647, %v1603_v40  ;;  %v723_v33 = vand.u32 2147483648, %v1603_v40 }
  0xc2   :  { %v671_v15 = vadd.f32 %v1135_v45, %v670_v7  ;;  %v699_v30 = vsub.f32 1.0, %v698_v18  ;;  %vm703_vm1 = vweird.f32 %v1143_v41  ;;  %1148 = vrcp.f32 %v1657_v26 }
  0xc3   :  { %v686_v29 = vadd.f32 %v1137_v54, %v685_v16  ;;  %v714_v36 = vsub.f32 1.0, %v713_v31  ;;  %v765_v38 = vmul.f32 %v757_v23, %v523_v19  ;;  %vm718_vm2 = vweird.f32 %v1145_v22  ;;  %vm704_vm3 = vmor %vm702_vm13, %vm703_vm1 }
  0xc4   :  { %v675_v28 = vsel %vm674_vm15, %v1135_v45, %v671_v15  ;;  %v700_v35 = vmul.f32 %v1143_v41, %v699_v30  ;;  %vm707_vm4 = vcmp.eq.f32.partialorder %v706_v13, 8.507059e+37  ;;  %v709_v46 = vor.u32 1.1754944e-38, %v708_v25 }
  0xc5   :  { %v680_v2 = vsel %vm1635_vm10, %v679_v63, %v675_v28  ;;  %v690_v34 = vsel %vm689_vm0, %v1137_v54, %v686_v29  ;;  %v715_v43 = vmul.f32 %v1145_v22, %v714_v36  ;;  %vm717_vm5 = vweird.f32 %v1603_v40 }
  0xc6   :  { %v759_v37 = vmul.f32 %v680_v2, %v1573_v6  ;;  %v695_v4 = vsel %vm1639_vm11, %v694_v1, %v690_v34  ;;  %v701_v24 = vadd.f32 %v1143_v41, %v700_v35  ;;  %v1147_v45 = vpop.eup %1146  ;;  %v766_v6 = vmul.f32 %v758_v32, %v537_v27  ;;  %vm719_vm7 = vmor %vm717_vm5, %vm718_vm2 }
  0xc7   :  { %v760_v42 = vmul.f32 %v695_v4, %v1576_v8  ;;  %v551_v44 = vpop.f32.mrf.mxu2  ;;  %v716_v49 = vadd.f32 %v1145_v22, %v715_v43  ;;  %vm722_vm6 = vcmp.eq.f32.partialorder %v721_v20, 8.507059e+37  ;;  %v728_v50 = vmul.f32 %v1147_v45, %v1649_v14 }
  0xc8   :  { %v565_v47 = vpop.f32.mrf.mxu3  ;;  %v705_v48 = vsel %vm704_vm3, %v1143_v41, %v701_v24  ;;  %v724_v51 = vor.u32 1.1754944e-38, %v723_v33  ;;  %v773_v52 = vpack.c.bf16 %v766_v6, %v765_v38  ;;  %v767_v53 = vmul.f32 %v759_v37, %v551_v44  ;;  %v525_v57 = vpop.f32.mrf.mxu0 }
  0xc9   :  { %v710_v8 = vsel %vm707_vm4, %v709_v46, %v705_v48  ;;  %v720_v54 = vsel %vm719_vm7, %v1145_v22, %v716_v49  ;;  %v729_v55 = vsub.f32 1.0, %v728_v50  ;;  %v768_v56 = vmul.f32 %v760_v42, %v565_v47  ;;  %v1149_v40 = vpop.eup %1148  ;;  %v539_v61 = vpop.f32.mrf.mxu1 }
  0xca   :  { %v761_v39 = vmul.f32 %v710_v8, %v1578_v9  ;;  %v725_v58 = vsel %vm722_vm6, %v724_v51, %v720_v54  ;;  %v736_v59 = vand.u32 2147483647, %v1649_v14  ;;  %v738_v60 = vand.u32 2147483648, %v1649_v14  ;;  %777 = vst [vmem:[%s1704_s3] sm:$0xff] %v773_v52 }
  0xcb   :  { %v762_v62 = vmul.f32 %v725_v58, %v1581_v11  ;;  %v730_v63 = vmul.f32 %v1147_v45, %v729_v55  ;;  %vm733_vm8 = vweird.f32 %v1147_v45  ;;  %v743_v9 = vmul.f32 %v1149_v40, %v1657_v26 }
  0xcc   :  { %v774_v0 = vpack.c.bf16 %v768_v56, %v767_v53  ;;  %v769_v1 = vmul.f32 %v761_v39, %v525_v57  ;;  %vm732_vm9 = vweird.f32 %v1649_v14  ;;  %vm737_vm11 = vcmp.eq.f32.partialorder %v736_v59, 8.507059e+37 }
  0xcd   :  { %v731_v3 = vadd.f32 %v1147_v45, %v730_v63  ;;  %v744_v5 = vsub.f32 1.0, %v743_v9  ;;  %v770_v7 = vmul.f32 %v762_v62, %v539_v61  ;;  %vm734_vm10 = vmor %vm732_vm9, %vm733_vm8  ;;  %v739_v10 = vor.u32 1.1754944e-38, %v738_v60 }
  0xce   :  { %v751_v41 = vand.u32 2147483647, %v1657_v26  ;;  %v753_v12 = vand.u32 2147483648, %v1657_v26  ;;  %778 = vst [vmem:[%s1704_s3 + $0x8] sm:$0xff] %v774_v0  ;;  %vm748_vm12 = vweird.f32 %v1149_v40  ;;  %vm747_vm13 = vweird.f32 %v1657_v26 }
  0xcf   :  { %v735_v11 = vsel %vm734_vm10, %v1147_v45, %v731_v3  ;;  %v745_v13 = vmul.f32 %v1149_v40, %v744_v5  ;;  %v775_v15 = vpack.c.bf16 %v770_v7, %v769_v1  ;;  %vm749_vm14 = vmor %vm747_vm13, %vm748_vm12  ;;  %v553_v22 = vpop.f32.mrf.mxu2 }
  0xd0   :  { %v740_v16 = vsel %vm737_vm11, %v739_v10, %v735_v11  ;;  %v754_v19 = vor.u32 1.1754944e-38, %v753_v12  ;;  %vm752_vm15 = vcmp.eq.f32.partialorder %v751_v41, 8.507059e+37  ;;  %v567_v27 = vpop.f32.mrf.mxu3 }
  0xd1   :  { %v763_v14 = vmul.f32 %v740_v16, %v1585_v17  ;;  %v746_v18 = vadd.f32 %v1149_v40, %v745_v13  ;;  %779 = vst [vmem:[%s1704_s3 + $0x10] sm:$0xff] %v775_v15 }
  0xd3   :  { %v750_v23 = vsel %vm749_vm14, %v1149_v40, %v746_v18  ;;  %v771_v29 = vmul.f32 %v763_v14, %v553_v22 }
  0xd4   :  { %v755_v25 = vsel %vm752_vm15, %v754_v19, %v750_v23 }
  0xd5   :  { %v764_v28 = vmul.f32 %v755_v25, %v1589_v21 }
  0xd7   :  { %v772_v30 = vmul.f32 %v764_v28, %v567_v27 }
  0xd9   :  { %v776_v31 = vpack.c.bf16 %v772_v30, %v771_v29 }
  0xdb   :  { %780 = vst [vmem:[%s1704_s3 + $0x18] sm:$0xff] %v776_v31 }

// kernel: _lambda_.37
= control target key start
LH: loop header
LB: loop body
LE: loop exit
PB: predicated region body
PF: predicated region fallthrough
CT: control target
= control target key end

     0   :  { %8 = vsyncpa [#allocation4], 0  ;;  %s603_s15 = smov [#allocation3]   ;;  %s604_s17 = smov 64   ;;  %s665_s0 = inlined_call_operand.vmem [shape: bf16[16,512], index: 0, kind: input, shape index: {}]   ;;  %s666_s1 = inlined_call_operand.hbm [shape: bf16[512,128], index: 1, kind: input, shape index: {}]   ;;  %s667_s2 = inlined_call_operand.vmem [shape: f32[16,128], index: 2, kind: input, shape index: {}]   ;;  %s668_s3 = inlined_call_operand.vmem [shape: f32[16,128], index: 3, kind: output, shape index: {}]  }
   0x1   :  { %s15_s14 = sshll.u32 %s666_s1, 4  ;;  %s17_s16 = sshll.u32 %s603_s15, 4  ;;  %s16_s14 = int_to_ptr.hbm [resolvable:$true] %s15_s14  ;;  %s18_s16 = int_to_ptr.vmem [resolvable:$true] %s17_s16 }
   0x2   :  { %s605_s18 = smov 4  }
   0x3   :  { %23 = dma.hbm_to_vmem [thread:$0]  %s16_s14, 4096, %s18_s16, [#allocation4], %s604_s17, %s604_s17, %s605_s18  }
   0x4   :  { %601 = dma.done.wait [#allocation4], 4096  }
   0x5   :  { %602 = vsyncadd [#allocation4], 4294963200  ;;  %v549_v0 = vld [vmem:[#allocation3 + $0x38] sm:$0xff]  ;;  %v548_v4 = vld [vmem:[#allocation3 + $0x30] sm:$0xff] }
   0x6   :  { %v557_v1 = vld [vmem:[#allocation3 + $0x78] sm:$0xff]  ;;  %318 = vmatpush.bf16.msra.mxu0 %v549_v0  ;;  %v556_v5 = vld [vmem:[#allocation3 + $0x70] sm:$0xff]  ;;  %v547_v8 = vld [vmem:[#allocation3 + $0x28] sm:$0xff] }
   0x7   :  { %v565_v2 = vld [vmem:[#allocation3 + $0xb8] sm:$0xff]  ;;  %332 = vmatpush.bf16.msra.mxu1 %v557_v1  ;;  %v564_v6 = vld [vmem:[#allocation3 + $0xb0] sm:$0xff]  ;;  %v555_v9 = vld [vmem:[#allocation3 + $0x68] sm:$0xff] }
   0x8   :  { %v573_v3 = vld [vmem:[#allocation3 + $0xf8] sm:$0xff]  ;;  %346 = vmatpush.bf16.msra.mxu2 %v565_v2  ;;  %v572_v7 = vld [vmem:[#allocation3 + $0xf0] sm:$0xff]  ;;  %v563_v10 = vld [vmem:[#allocation3 + $0xa8] sm:$0xff] }
   0x9   :  { %360 = vmatpush.bf16.msra.mxu3 %v573_v3  ;;  %v571_v11 = vld [vmem:[#allocation3 + $0xe8] sm:$0xff]  ;;  %v546_v12 = vld [vmem:[#allocation3 + $0x20] sm:$0xff]  ;;  %v545_v16 = vld [vmem:[#allocation3 + $0x18] sm:$0xff] }
   0xa   :  { %319 = vmatpush.bf16.msra.mxu0 %v548_v4  ;;  %v554_v13 = vld [vmem:[#allocation3 + $0x60] sm:$0xff]  ;;  %v553_v17 = vld [vmem:[#allocation3 + $0x58] sm:$0xff]  ;;  %v544_v20 = vld [vmem:[#allocation3 + $0x10] sm:$0xff] }
   0xb   :  { %333 = vmatpush.bf16.msra.mxu1 %v556_v5  ;;  %v562_v14 = vld [vmem:[#allocation3 + $0xa0] sm:$0xff]  ;;  %v561_v18 = vld [vmem:[#allocation3 + $0x98] sm:$0xff]  ;;  %v552_v21 = vld [vmem:[#allocation3 + $0x50] sm:$0xff] }
   0xc   :  { %347 = vmatpush.bf16.msra.mxu2 %v564_v6  ;;  %v570_v15 = vld [vmem:[#allocation3 + $0xe0] sm:$0xff]  ;;  %v569_v19 = vld [vmem:[#allocation3 + $0xd8] sm:$0xff]  ;;  %v560_v22 = vld [vmem:[#allocation3 + $0x90] sm:$0xff] }
   0xd   :  { %361 = vmatpush.bf16.msra.mxu3 %v572_v7  ;;  %v568_v23 = vld [vmem:[#allocation3 + $0xd0] sm:$0xff]  ;;  %v543_v24 = vld [vmem:[#allocation3 + $0x8] sm:$0xff]  ;;  %v542_v28 = vld [vmem:[#allocation3] sm:$0xff] }
   0xe   :  { %320 = vmatpush.bf16.msra.mxu0 %v547_v8  ;;  %v551_v25 = vld [vmem:[#allocation3 + $0x48] sm:$0xff]  ;;  %v550_v29 = vld [vmem:[#allocation3 + $0x40] sm:$0xff]  ;;  %v540_v33 = vld [vmem:[%s665_s0 + $0xc] sm:$0xf0] }
   0xf   :  { %334 = vmatpush.bf16.msra.mxu1 %v555_v9  ;;  %v559_v26 = vld [vmem:[#allocation3 + $0x88] sm:$0xff]  ;;  %v558_v30 = vld [vmem:[#allocation3 + $0x80] sm:$0xff]  ;;  %v398_v35 = vld [vmem:[%s665_s0 + $0x10] sm:$0xf0] }
  0x10   :  { %348 = vmatpush.bf16.msra.mxu2 %v563_v10  ;;  %v567_v27 = vld [vmem:[#allocation3 + $0xc8] sm:$0xff]  ;;  %v566_v31 = vld [vmem:[#allocation3 + $0xc0] sm:$0xff]  ;;  %v541_v37 = vld [vmem:[%s665_s0 + $0x14] sm:$0xf0] }
  0x11   :  { %362 = vmatpush.bf16.msra.mxu3 %v571_v11  ;;  %v396_v32 = vld [vmem:[%s665_s0] sm:$0xf]  ;;  %v538_v34 = vld [vmem:[%s665_s0 + $0x4] sm:$0xf]  ;;  %v404_v36 = vld [vmem:[%s665_s0 + $0x8] sm:$0xf] }
  0x12   :  { %321 = vmatpush.bf16.msra.mxu0 %v546_v12  ;;  %v539_v38 = vld [vmem:[%s665_s0 + $0xc] sm:$0xf]  ;;  %v406_v39 = vld [vmem:[%s665_s0 + $0x18] sm:$0xf0]  ;;  %v397_v40 = vor.u32 %v540_v33, %v396_v32  ;;  %v401_v41 = vor.u32 %v538_v34, %v398_v35  ;;  %v405_v42 = vor.u32 %v541_v37, %v404_v36  ;;  %v383_v50 = vld [vmem:[%s667_s2] sm:$0xff] }
  0x13   :  { %335 = vmatpush.bf16.msra.mxu1 %v554_v13  ;;  %v409_v43 = vor.u32 %v539_v38, %v406_v39  ;;  %v384_v59 = vld [vmem:[%s667_s2 + $0x8] sm:$0xff] }
  0x14   :  { %349 = vmatpush.bf16.msra.mxu2 %v562_v14 }
  0x15   :  { %363 = vmatpush.bf16.msra.mxu3 %v570_v15 }
  0x16   :  { %322 = vmatpush.bf16.msra.mxu0 %v545_v16 }
  0x17   :  { %336 = vmatpush.bf16.msra.mxu1 %v553_v17 }
  0x18   :  { %350 = vmatpush.bf16.msra.mxu2 %v561_v18 }
  0x19   :  { %364 = vmatpush.bf16.msra.mxu3 %v569_v19 }
  0x1a   :  { %323 = vmatpush.bf16.msra.mxu0 %v544_v20 }
  0x1b   :  { %337 = vmatpush.bf16.msra.mxu1 %v552_v21 }
  0x1c   :  { %351 = vmatpush.bf16.msra.mxu2 %v560_v22 }
  0x1d   :  { %365 = vmatpush.bf16.msra.mxu3 %v568_v23 }
  0x1e   :  { %324 = vmatpush.bf16.msra.mxu0 %v543_v24 }
  0x1f   :  { %338 = vmatpush.bf16.msra.mxu1 %v551_v25 }
  0x20   :  { %352 = vmatpush.bf16.msra.mxu2 %v559_v26 }
  0x21   :  { %366 = vmatpush.bf16.msra.mxu3 %v567_v27 }
  0x22   :  { %325 = vmatpush.bf16.msra.mxu0 %v542_v28 }
  0x23   :  { %339 = vmatpush.bf16.msra.mxu1 %v550_v29 }
  0x24   :  { %353 = vmatpush.bf16.msra.mxu2 %v558_v30 }
  0x25   :  { %367 = vmatpush.bf16.msra.mxu3 %v566_v31  ;;  %326 = vmatmul.bf16.vlgmr.msra.gmra.mxu0 %v397_v40 }
  0x26   :  { %340 = vmatmul.bf16.vlgmr.msra.gmra.mxu1 %v401_v41 }
  0x27   :  { %354 = vmatmul.bf16.vlgmr.msra.gmra.mxu2 %v405_v42 }
  0x28   :  { %368 = vmatmul.bf16.vlgmr.msra.gmra.mxu3 %v409_v43 }
  0xa2   :  { %v327_v44 = vpop.f32.mrf.mxu0 }
  0xa3   :  { %v341_v45 = vpop.f32.mrf.mxu1 }
  0xa4   :  { %v342_v46 = vadd.f32 %v341_v45, %v327_v44 }
  0xaa   :  { %v355_v47 = vpop.f32.mrf.mxu2  ;;  %v329_v52 = vpop.f32.mrf.mxu0 }
  0xab   :  { %v369_v48 = vpop.f32.mrf.mxu3  ;;  %v356_v49 = vadd.f32 %v355_v47, %v342_v46  ;;  %v343_v53 = vpop.f32.mrf.mxu1 }
  0xac   :  { %v344_v55 = vadd.f32 %v343_v53, %v329_v52 }
  0xad   :  { %v370_v51 = vadd.f32 %v369_v48, %v356_v49 }
  0xaf   :  { %v385_v54 = vadd.f32 %v383_v50, %v370_v51 }
  0xb1   :  { %387 = vst [vmem:[%s668_s3] sm:$0xff] %v385_v54 }
  0xb2   :  { %v357_v56 = vpop.f32.mrf.mxu2 }
  0xb3   :  { %v358_v57 = vadd.f32 %v357_v56, %v344_v55  ;;  %v371_v58 = vpop.f32.mrf.mxu3 }
  0xb5   :  { %v372_v60 = vadd.f32 %v371_v58, %v358_v57 }
  0xb7   :  { %v386_v61 = vadd.f32 %v384_v59, %v372_v60 }
  0xb9   :  { %388 = vst [vmem:[%s668_s3 + $0x8] sm:$0xff] %v386_v61 }
  0xba   :  { %393 = vsyncpa [#allocation4], 1 }

// kernel: _lambda_.28
= control target key start
LH: loop header
LB: loop body
LE: loop exit
PB: predicated region body
PF: predicated region fallthrough
CT: control target
= control target key end

     0   :  { %s709_s1 = inlined_call_operand.vmem [shape: bf16[512,128], index: 1, kind: input, shape index: {}]   ;;  %s710_s0 = inlined_call_operand.vmem [shape: bf16[16,512], index: 0, kind: input, shape index: {}]   ;;  %s711_s2 = inlined_call_operand.vmem [shape: f32[16,128], index: 2, kind: input, shape index: {}]   ;;  %s712_s3 = inlined_call_operand.vmem [shape: f32[16,128], index: 3, kind: output, shape index: {}]  }
   0x1   :  { %v532_v0 = vld [vmem:[%s709_s1 + $0x38] sm:$0xff]  ;;  %v531_v4 = vld [vmem:[%s709_s1 + $0x30] sm:$0xff]  ;;  %v530_v8 = vld [vmem:[%s709_s1 + $0x28] sm:$0xff] }
   0x2   :  { %v540_v1 = vld [vmem:[%s709_s1 + $0x78] sm:$0xff]  ;;  %302 = vmatpush.bf16.msra.mxu0 %v532_v0  ;;  %v539_v5 = vld [vmem:[%s709_s1 + $0x70] sm:$0xff]  ;;  %v538_v9 = vld [vmem:[%s709_s1 + $0x68] sm:$0xff] }
   0x3   :  { %v548_v2 = vld [vmem:[%s709_s1 + $0xb8] sm:$0xff]  ;;  %316 = vmatpush.bf16.msra.mxu1 %v540_v1  ;;  %v547_v6 = vld [vmem:[%s709_s1 + $0xb0] sm:$0xff]  ;;  %v546_v10 = vld [vmem:[%s709_s1 + $0xa8] sm:$0xff] }
   0x4   :  { %v556_v3 = vld [vmem:[%s709_s1 + $0xf8] sm:$0xff]  ;;  %330 = vmatpush.bf16.msra.mxu2 %v548_v2  ;;  %v555_v7 = vld [vmem:[%s709_s1 + $0xf0] sm:$0xff]  ;;  %v554_v11 = vld [vmem:[%s709_s1 + $0xe8] sm:$0xff] }
   0x5   :  { %344 = vmatpush.bf16.msra.mxu3 %v556_v3  ;;  %v529_v12 = vld [vmem:[%s709_s1 + $0x20] sm:$0xff]  ;;  %v528_v16 = vld [vmem:[%s709_s1 + $0x18] sm:$0xff]  ;;  %v527_v20 = vld [vmem:[%s709_s1 + $0x10] sm:$0xff] }
   0x6   :  { %303 = vmatpush.bf16.msra.mxu0 %v531_v4  ;;  %v537_v13 = vld [vmem:[%s709_s1 + $0x60] sm:$0xff]  ;;  %v536_v17 = vld [vmem:[%s709_s1 + $0x58] sm:$0xff]  ;;  %v535_v21 = vld [vmem:[%s709_s1 + $0x50] sm:$0xff] }
   0x7   :  { %317 = vmatpush.bf16.msra.mxu1 %v539_v5  ;;  %v545_v14 = vld [vmem:[%s709_s1 + $0xa0] sm:$0xff]  ;;  %v544_v18 = vld [vmem:[%s709_s1 + $0x98] sm:$0xff]  ;;  %v543_v22 = vld [vmem:[%s709_s1 + $0x90] sm:$0xff] }
   0x8   :  { %331 = vmatpush.bf16.msra.mxu2 %v547_v6  ;;  %v553_v15 = vld [vmem:[%s709_s1 + $0xe0] sm:$0xff]  ;;  %v552_v19 = vld [vmem:[%s709_s1 + $0xd8] sm:$0xff]  ;;  %v551_v23 = vld [vmem:[%s709_s1 + $0xd0] sm:$0xff] }
   0x9   :  { %345 = vmatpush.bf16.msra.mxu3 %v555_v7  ;;  %v526_v24 = vld [vmem:[%s709_s1 + $0x8] sm:$0xff]  ;;  %v525_v28 = vld [vmem:[%s709_s1] sm:$0xff]  ;;  %v523_v33 = vld [vmem:[%s710_s0 + $0xc] sm:$0xf0] }
   0xa   :  { %304 = vmatpush.bf16.msra.mxu0 %v530_v8  ;;  %v534_v25 = vld [vmem:[%s709_s1 + $0x48] sm:$0xff]  ;;  %v533_v29 = vld [vmem:[%s709_s1 + $0x40] sm:$0xff]  ;;  %v381_v35 = vld [vmem:[%s710_s0 + $0x10] sm:$0xf0] }
   0xb   :  { %318 = vmatpush.bf16.msra.mxu1 %v538_v9  ;;  %v542_v26 = vld [vmem:[%s709_s1 + $0x88] sm:$0xff]  ;;  %v541_v30 = vld [vmem:[%s709_s1 + $0x80] sm:$0xff]  ;;  %v524_v37 = vld [vmem:[%s710_s0 + $0x14] sm:$0xf0] }
   0xc   :  { %332 = vmatpush.bf16.msra.mxu2 %v546_v10  ;;  %v550_v27 = vld [vmem:[%s709_s1 + $0xc8] sm:$0xff]  ;;  %v549_v31 = vld [vmem:[%s709_s1 + $0xc0] sm:$0xff]  ;;  %v389_v39 = vld [vmem:[%s710_s0 + $0x18] sm:$0xf0] }
   0xd   :  { %346 = vmatpush.bf16.msra.mxu3 %v554_v11  ;;  %v379_v32 = vld [vmem:[%s710_s0] sm:$0xf]  ;;  %v521_v34 = vld [vmem:[%s710_s0 + $0x4] sm:$0xf]  ;;  %v387_v36 = vld [vmem:[%s710_s0 + $0x8] sm:$0xf] }
   0xe   :  { %305 = vmatpush.bf16.msra.mxu0 %v529_v12  ;;  %v522_v38 = vld [vmem:[%s710_s0 + $0xc] sm:$0xf]  ;;  %v380_v40 = vor.u32 %v523_v33, %v379_v32  ;;  %v384_v41 = vor.u32 %v521_v34, %v381_v35  ;;  %v388_v42 = vor.u32 %v524_v37, %v387_v36  ;;  %v367_v50 = vld [vmem:[%s711_s2] sm:$0xff] }
   0xf   :  { %319 = vmatpush.bf16.msra.mxu1 %v537_v13  ;;  %v392_v43 = vor.u32 %v522_v38, %v389_v39  ;;  %v368_v59 = vld [vmem:[%s711_s2 + $0x8] sm:$0xff] }
  0x10   :  { %333 = vmatpush.bf16.msra.mxu2 %v545_v14 }
  0x11   :  { %347 = vmatpush.bf16.msra.mxu3 %v553_v15 }
  0x12   :  { %306 = vmatpush.bf16.msra.mxu0 %v528_v16 }
  0x13   :  { %320 = vmatpush.bf16.msra.mxu1 %v536_v17 }
  0x14   :  { %334 = vmatpush.bf16.msra.mxu2 %v544_v18 }
  0x15   :  { %348 = vmatpush.bf16.msra.mxu3 %v552_v19 }
  0x16   :  { %307 = vmatpush.bf16.msra.mxu0 %v527_v20 }
  0x17   :  { %321 = vmatpush.bf16.msra.mxu1 %v535_v21 }
  0x18   :  { %335 = vmatpush.bf16.msra.mxu2 %v543_v22 }
  0x19   :  { %349 = vmatpush.bf16.msra.mxu3 %v551_v23 }
  0x1a   :  { %308 = vmatpush.bf16.msra.mxu0 %v526_v24 }
  0x1b   :  { %322 = vmatpush.bf16.msra.mxu1 %v534_v25 }
  0x1c   :  { %336 = vmatpush.bf16.msra.mxu2 %v542_v26 }
  0x1d   :  { %350 = vmatpush.bf16.msra.mxu3 %v550_v27 }
  0x1e   :  { %309 = vmatpush.bf16.msra.mxu0 %v525_v28 }
  0x1f   :  { %323 = vmatpush.bf16.msra.mxu1 %v533_v29 }
  0x20   :  { %337 = vmatpush.bf16.msra.mxu2 %v541_v30 }
  0x21   :  { %351 = vmatpush.bf16.msra.mxu3 %v549_v31  ;;  %310 = vmatmul.bf16.vlgmr.msra.gmra.mxu0 %v380_v40 }
  0x22   :  { %324 = vmatmul.bf16.vlgmr.msra.gmra.mxu1 %v384_v41 }
  0x23   :  { %338 = vmatmul.bf16.vlgmr.msra.gmra.mxu2 %v388_v42 }
  0x24   :  { %352 = vmatmul.bf16.vlgmr.msra.gmra.mxu3 %v392_v43 }
  0x9e   :  { %v311_v44 = vpop.f32.mrf.mxu0 }
  0x9f   :  { %v325_v45 = vpop.f32.mrf.mxu1 }
  0xa0   :  { %v326_v46 = vadd.f32 %v325_v45, %v311_v44 }
  0xa6   :  { %v339_v47 = vpop.f32.mrf.mxu2  ;;  %v313_v52 = vpop.f32.mrf.mxu0 }
  0xa7   :  { %v353_v48 = vpop.f32.mrf.mxu3  ;;  %v340_v49 = vadd.f32 %v339_v47, %v326_v46  ;;  %v327_v53 = vpop.f32.mrf.mxu1 }
  0xa8   :  { %v328_v55 = vadd.f32 %v327_v53, %v313_v52 }
  0xa9   :  { %v354_v51 = vadd.f32 %v353_v48, %v340_v49 }
  0xab   :  { %v369_v54 = vadd.f32 %v367_v50, %v354_v51 }
  0xad   :  { %371 = vst [vmem:[%s712_s3] sm:$0xff] %v369_v54 }
  0xae   :  { %v341_v56 = vpop.f32.mrf.mxu2 }
  0xaf   :  { %v342_v57 = vadd.f32 %v341_v56, %v328_v55  ;;  %v355_v58 = vpop.f32.mrf.mxu3 }
  0xb1   :  { %v356_v60 = vadd.f32 %v355_v58, %v342_v57 }
  0xb3   :  { %v370_v61 = vadd.f32 %v368_v59, %v356_v60 }
  0xb5   :  { %372 = vst [vmem:[%s712_s3 + $0x8] sm:$0xff] %v370_v61 }

// kernel: _lambda_.39
= control target key start
LH: loop header
LB: loop body
LE: loop exit
PB: predicated region body
PF: predicated region fallthrough
CT: control target
= control target key end

     0   :  { %7 = vsyncpa [#allocation4], 0  ;;  %s285_s0 = inlined_call_operand.vmem [shape: bf16[16,128], index: 0, kind: input, shape index: {}]   ;;  %s286_s1 = inlined_call_operand.hbm [shape: bf16[128,128], index: 1, kind: input, shape index: {}]   ;;  %s287_s2 = inlined_call_operand.hbm [shape: f32[16,128], index: 2, kind: output, shape index: {}]  }
   0x1   :  { %8 = vsyncpa [#allocation5], 0  ;;  %s15_s11 = sshll.u32 %s286_s1, 4  ;;  %s255_s12 = smov [#allocation3]   ;;  %s16_s11 = int_to_ptr.hbm [resolvable:$true] %s15_s11 }
   0x2   :  { %s17_s13 = sshll.u32 %s255_s12, 4  ;;  %s256_s14 = smov 64   ;;  %s18_s13 = int_to_ptr.vmem [resolvable:$true] %s17_s13 }
   0x3   :  { %s257_s15 = smov 4  }
   0x4   :  { %23 = dma.hbm_to_vmem [thread:$0]  %s16_s11, 1024, %s18_s13, [#allocation4], %s256_s14, %s256_s14, %s257_s15  }
   0x5   :  { %251 = dma.done.wait [#allocation4], 1024  }
   0x6   :  { %252 = vsyncadd [#allocation4], 4294966272  ;;  %v196_v0 = vld [vmem:[#allocation3 + $0x38] sm:$0xff]  ;;  %v195_v1 = vld [vmem:[#allocation3 + $0x30] sm:$0xff]  ;;  %s258_s17 = smov [#allocation6]   ;;  %s139_s21 = sshll.u32 %s287_s2, 4  ;;  %s140_s21 = int_to_ptr.hbm [resolvable:$true] %s139_s21 }
   0x7   :  { %108 = vmatpush.bf16.msra.mxu0 %v196_v0  ;;  %v194_v2 = vld [vmem:[#allocation3 + $0x28] sm:$0xff]  ;;  %v193_v3 = vld [vmem:[#allocation3 + $0x20] sm:$0xff]  ;;  %v192_v4 = vld [vmem:[#allocation3 + $0x18] sm:$0xff]  ;;  %s137_s18 = sshll.u32 %s258_s17, 4  ;;  %s259_s22 = smov 128   ;;  %s138_s18 = int_to_ptr.vmem [resolvable:$true] %s137_s18 }
   0x8   :  { %v191_v5 = vld [vmem:[#allocation3 + $0x10] sm:$0xff]  ;;  %v190_v6 = vld [vmem:[#allocation3 + $0x8] sm:$0xff]  ;;  %v189_v7 = vld [vmem:[#allocation3] sm:$0xff]  ;;  %s260_s23 = smov 8  }
   0x9   :  { %v188_v8 = vld [vmem:[%s285_s0] sm:$0xff] }
   0xb   :  { %109 = vmatpush.bf16.msra.mxu0 %v195_v1 }
   0xf   :  { %110 = vmatpush.bf16.msra.mxu0 %v194_v2 }
  0x13   :  { %111 = vmatpush.bf16.msra.mxu0 %v193_v3 }
  0x17   :  { %112 = vmatpush.bf16.msra.mxu0 %v192_v4 }
  0x1b   :  { %113 = vmatpush.bf16.msra.mxu0 %v191_v5 }
  0x1f   :  { %114 = vmatpush.bf16.msra.mxu0 %v190_v6 }
  0x23   :  { %115 = vmatpush.bf16.msra.mxu0 %v189_v7 }
  0x26   :  { %116 = vmatmul.bf16.vlgmr.msra.gmra.mxu0 %v188_v8 }
  0xa3   :  { %v117_v9 = vpop.f32.mrf.mxu0 }
  0xa4   :  { %131 = vst [vmem:[#allocation6] sm:$0xff] %v117_v9 }
  0xab   :  { %v119_v10 = vpop.f32.mrf.mxu0 }
  0xac   :  { %132 = vst [vmem:[#allocation6 + $0x8] sm:$0xff] %v119_v10 }
  0xad   :  { %145 = dma.vmem_to_hbm [thread:$0]  %s138_s18, 256, %s140_s21, [#allocation5], %s259_s22, %s259_s22, %s260_s23  }
  0xae   :  { %253 = dma.done.wait [#allocation5], 256  }
  0xaf   :  { %254 = vsyncadd [#allocation5], 4294967040 }
  0xb0   :  { %150 = vsyncpa [#allocation4], 1 }
  0xb1   :  { %151 = vsyncpa [#allocation5], 1 }

</bundles_post_ra>
